<compile_context>
chip_gen: v7x
topology: tpu7x:2x2x1
jax: 0.10.0
libtpu: 0.0.40
codegen_flags: <defaults>
</compile_context>

<pallas_src>
import functools

import jax
import jax.numpy as jnp
from jax.experimental import pallas as pl
from jax.experimental.pallas import tpu as pltpu


# ----------------------------------------------------------------------------
# Kernel
# ----------------------------------------------------------------------------
def _vae_kernel(lat_pad,
                x_ref, eps_ref,
                we1_ref, be1_ref,      # encoder layer 1        (bf16 W, f32 b)
                wh_ref, bh_ref,        # fused mu|log_var head  (bf16 W, f32 b)
                wd1_ref, bd1_ref,      # decoder layer 1        (bf16 W, f32 b)
                wd2_ref, bd2_ref,      # decoder layer 2        (bf16 W, f32 b)
                recons_ref, mulv_ref):
    bf16 = jnp.bfloat16
    x = x_ref[...]                                   # (TILE_N, D) f32

    # ---- encode: Linear + ReLU (bf16 MXU inputs, f32 accumulate) ----
    h = jnp.dot(x.astype(bf16), we1_ref[...], preferred_element_type=jnp.float32)
    h = jnp.maximum(h + be1_ref[...], 0.0)

    # ---- fused mu|log_var head (lane-dense, 2*lat_pad wide) ----
    head = jnp.dot(h.astype(bf16), wh_ref[...], preferred_element_type=jnp.float32)
    head = head + bh_ref[...]
    mulv_ref[...] = head                             # single lane-dense store

    mu = head[:, :lat_pad]                           # 128-lane aligned slices
    log_var = head[:, lat_pad:]

    # ---- reparameterize: z = mu + eps * exp(0.5 * log_var)  (EUP exp, f32) ----
    z = mu + eps_ref[...] * jnp.exp(0.5 * log_var)

    # ---- decode: Linear + ReLU + Linear + sigmoid ----
    hd = jnp.dot(z.astype(bf16), wd1_ref[...], preferred_element_type=jnp.float32)
    hd = jnp.maximum(hd + bd1_ref[...], 0.0)
    logits = jnp.dot(hd.astype(bf16), wd2_ref[...], preferred_element_type=jnp.float32)
    logits = logits + bd2_ref[...]
    recons_ref[...] = jax.nn.sigmoid(logits)


# ----------------------------------------------------------------------------
# Parameter packing (fuse + pad heads, cast weights to bf16)
# ----------------------------------------------------------------------------
def pack_params(p, latent, lat_pad):
    bf16 = jnp.bfloat16
    D, H = p["we1"].shape

    # fused mu|log_var head: mu in lanes [0, lat_pad), log_var in [lat_pad, 2*lat_pad)
    wh = jnp.zeros((H, 2 * lat_pad), jnp.float32)
    wh = wh.at[:, :latent].set(p["wmu"]).at[:, lat_pad:lat_pad + latent].set(p["wlv"])
    bh = jnp.zeros((1, 2 * lat_pad), jnp.float32)
    bh = bh.at[:, :latent].set(p["bmu"]).at[:, lat_pad:lat_pad + latent].set(p["blv"])

    # decoder layer 1 padded with zero rows for the padded latent lanes
    wd1 = jnp.zeros((lat_pad, H), jnp.float32).at[:latent].set(p["wd1"])

    return dict(
        we1=p["we1"].astype(bf16), be1=p["be1"],
        wh=wh.astype(bf16), bh=bh,
        wd1=wd1.astype(bf16), bd1=p["bd1"],
        wd2=p["wd2"].astype(bf16), bd2=p["bd2"],
    )


# ----------------------------------------------------------------------------
# Wrapper
# ----------------------------------------------------------------------------
def vae_forward(x, eps, params, *, latent, tile_n=128):
    """x: (N, D) f32, eps: (N, latent) f32 -> (recons (N, D), mu, log_var)."""
    N, D = x.shape
    H = params["we1"].shape[1]
    lat_pad = ((latent + 127) // 128) * 128          # lane-dense latent width

    packed = pack_params(params, latent, lat_pad)

    n_tiles = pl.cdiv(N, tile_n)
    n_pad = n_tiles * tile_n
    x_p = jnp.zeros((n_pad, D), jnp.float32).at[:N].set(x)
    eps_p = jnp.zeros((n_pad, lat_pad), jnp.float32).at[:N, :latent].set(eps)

    args = (
        x_p, eps_p,
        packed["we1"], packed["be1"],
        packed["wh"], packed["bh"],
        packed["wd1"], packed["bd1"],
        packed["wd2"], packed["bd2"],
    )

    row_map = lambda i: (i, 0)       # activation tiles march along the batch
    const_map = lambda i: (0, 0)     # weights/biases stay resident in VMEM

    in_specs = [
        pl.BlockSpec((tile_n, D), row_map),          # x
        pl.BlockSpec((tile_n, lat_pad), row_map),    # eps
    ] + [pl.BlockSpec(a.shape, const_map) for a in args[2:]]

    out_specs = (
        pl.BlockSpec((tile_n, D), row_map),          # recons
        pl.BlockSpec((tile_n, 2 * lat_pad), row_map),  # mu|log_var slab
    )

    flops = 2 * n_pad * (D * H + H * 2 * lat_pad + lat_pad * H + H * D)
    transcendentals = n_pad * (lat_pad + D)          # exp + sigmoid
    bytes_accessed = int(
        sum(a.size * a.dtype.itemsize for a in args)
        + n_pad * D * 4 + n_pad * 2 * lat_pad * 4
    )

    recons, mulv = pl.pallas_call(
        functools.partial(_vae_kernel, lat_pad),
        grid=(n_tiles,),
        in_specs=in_specs,
        out_specs=out_specs,
        out_shape=(
            jax.ShapeDtypeStruct((n_pad, D), jnp.float32),
            jax.ShapeDtypeStruct((n_pad, 2 * lat_pad), jnp.float32),
        ),
        compiler_params=pltpu.CompilerParams(
            dimension_semantics=("parallel",)),      # megacore on v7x
        cost_estimate=pl.CostEstimate(
            flops=flops,
            transcendentals=transcendentals,
            bytes_accessed=bytes_accessed),
    )(*args)

    recons = recons[:N]
    mu = mulv[:N, :latent]
    log_var = mulv[:N, lat_pad:lat_pad + latent]
    return recons, mu, log_var


# ----------------------------------------------------------------------------
# Synthetic params + pure-JAX reference
# ----------------------------------------------------------------------------
def init_params(key, D, H, latent):
    ks = jax.random.split(key, 6)

    def lin(k, fan_in, fan_out):
        w = jax.random.normal(k, (fan_in, fan_out), jnp.float32) / jnp.sqrt(fan_in)
        b = jnp.zeros((1, fan_out), jnp.float32)
        return w, b

    we1, be1 = lin(ks[0], D, H)
    wmu, bmu = lin(ks[1], H, latent)
    wlv, blv = lin(ks[2], H, latent)
    wd1, bd1 = lin(ks[3], latent, H)
    wd2, bd2 = lin(ks[4], H, D)
    return dict(we1=we1, be1=be1, wmu=wmu, bmu=bmu, wlv=wlv, blv=blv,
                wd1=wd1, bd1=bd1, wd2=wd2, bd2=bd2)


def vae_forward_ref(x, eps, p):
    """Pure-JAX reference mirroring the kernel's bf16-input / f32-acc matmuls."""
    bf16 = jnp.bfloat16

    def mm(a, w):
        return jnp.dot(a.astype(bf16), w.astype(bf16),
                       preferred_element_type=jnp.float32)

    h = jnp.maximum(mm(x, p["we1"]) + p["be1"], 0.0)
    mu = mm(h, p["wmu"]) + p["bmu"]
    log_var = mm(h, p["wlv"]) + p["blv"]
    z = mu + eps * jnp.exp(0.5 * log_var)
    hd = jnp.maximum(mm(z, p["wd1"]) + p["bd1"], 0.0)
    recons = jax.nn.sigmoid(mm(hd, p["wd2"]) + p["bd2"])
    return recons, mu, log_var


# ----------------------------------------------------------------------------
if __name__ == "__main__":
    # MXU-friendly but still small shapes: two 128-row batch tiles.
    N, D, H, LATENT = 256, 128, 256, 16
    TILE_N = 128

    key = jax.random.PRNGKey(0)
    k_x, k_eps, k_p = jax.random.split(key, 3)

    x = jax.random.uniform(k_x, (N, D), jnp.float32)           # "images" in [0, 1)
    eps = jax.random.normal(k_eps, (N, LATENT), jnp.float32)   # torch.randn_like
    params = init_params(k_p, D, H, LATENT)

    recons, mu, log_var = vae_forward(x, eps, params, latent=LATENT, tile_n=TILE_N)
    jax.block_until_ready((recons, mu, log_var))

    # correctness vs pure-JAX reference (same bf16 weights, f32 accumulation)
    r_ref, mu_ref, lv_ref = vae_forward_ref(x, eps, params)
    assert recons.shape == (N, D) and mu.shape == (N, LATENT) and log_var.shape == (N, LATENT)
    assert jnp.allclose(recons, r_ref, atol=1e-2), "recons mismatch"
    assert jnp.allclose(mu, mu_ref, atol=1e-2), "mu mismatch"
    assert jnp.allclose(log_var, lv_ref, atol=1e-2), "log_var mismatch"

    print("KERNEL_OK")
</pallas_src>

<mosaic_0001>
module attributes {stable_mosaic.version = 11 : i64} {
  func.func @_vae_kernel(%arg0: i32, %arg1: memref<128x128xf32, #tpu.memory_space<vmem>>, %arg2: memref<128x128xf32, #tpu.memory_space<vmem>>, %arg3: memref<128x256xbf16, #tpu.memory_space<vmem>>, %arg4: memref<1x256xf32, #tpu.memory_space<vmem>>, %arg5: memref<256x256xbf16, #tpu.memory_space<vmem>>, %arg6: memref<1x256xf32, #tpu.memory_space<vmem>>, %arg7: memref<128x256xbf16, #tpu.memory_space<vmem>>, %arg8: memref<1x256xf32, #tpu.memory_space<vmem>>, %arg9: memref<256x128xbf16, #tpu.memory_space<vmem>>, %arg10: memref<1x128xf32, #tpu.memory_space<vmem>>, %arg11: memref<128x128xf32, #tpu.memory_space<vmem>>, %arg12: memref<128x256xf32, #tpu.memory_space<vmem>>) attributes {dimension_semantics = [#tpu.dimension_semantics<parallel>], iteration_bounds = array<i64: 2>, scalar_prefetch = 0 : i64, scratch_operands = 0 : i64, tpu.core_type = #tpu.core_type<tc>, window_params = [{transform_indices = @transform_0, window_bounds = array<i64: 128, 128>}, {transform_indices = @transform_1, window_bounds = array<i64: 128, 128>}, {pipeline_mode = #tpu.pipeline_mode<synchronous>, transform_indices = @transform_2, window_bounds = array<i64: 128, 256>}, {pipeline_mode = #tpu.pipeline_mode<synchronous>, transform_indices = @transform_3, window_bounds = array<i64: 1, 256>}, {pipeline_mode = #tpu.pipeline_mode<synchronous>, transform_indices = @transform_4, window_bounds = array<i64: 256, 256>}, {pipeline_mode = #tpu.pipeline_mode<synchronous>, transform_indices = @transform_5, window_bounds = array<i64: 1, 256>}, {pipeline_mode = #tpu.pipeline_mode<synchronous>, transform_indices = @transform_6, window_bounds = array<i64: 128, 256>}, {pipeline_mode = #tpu.pipeline_mode<synchronous>, transform_indices = @transform_7, window_bounds = array<i64: 1, 256>}, {pipeline_mode = #tpu.pipeline_mode<synchronous>, transform_indices = @transform_8, window_bounds = array<i64: 256, 128>}, {pipeline_mode = #tpu.pipeline_mode<synchronous>, transform_indices = @transform_9, window_bounds = array<i64: 1, 128>}, {transform_indices = @transform_10, window_bounds = array<i64: 128, 128>}, {transform_indices = @transform_11, window_bounds = array<i64: 128, 256>}]} {
    %c0 = arith.constant 0 : index
    %c0_0 = arith.constant 0 : index
    %0 = vector.load %arg1[%c0, %c0_0] : memref<128x128xf32, #tpu.memory_space<vmem>>, vector<128x128xf32>
    %1 = arith.truncf %0 : vector<128x128xf32> to vector<128x128xbf16>
    %c0_1 = arith.constant 0 : index
    %c0_2 = arith.constant 0 : index
    %2 = vector.load %arg3[%c0_1, %c0_2] : memref<128x256xbf16, #tpu.memory_space<vmem>>, vector<128x256xbf16>
    %cst = arith.constant dense<0.000000e+00> : vector<128x256xf32>
    %3 = tpu.matmul %1, %2, %cst {dimension_numbers = #tpu.dot_dimension_numbers<[1], [0], [0], [1], [0, 0, 1, 1], [], []>} : vector<128x128xbf16>, vector<128x256xbf16>, vector<128x256xf32> -> vector<128x256xf32>
    %c0_3 = arith.constant 0 : index
    %c0_4 = arith.constant 0 : index
    %4 = vector.load %arg4[%c0_3, %c0_4] : memref<1x256xf32, #tpu.memory_space<vmem>>, vector<1x256xf32>
    %5 = vector.broadcast %4 : vector<1x256xf32> to vector<128x256xf32>
    %6 = arith.addf %3, %5 : vector<128x256xf32>
    %cst_5 = arith.constant 0.000000e+00 : f32
    %7 = vector.broadcast %cst_5 : f32 to vector<128x256xf32>
    %8 = arith.maximumf %6, %7 : vector<128x256xf32>
    %9 = arith.truncf %8 : vector<128x256xf32> to vector<128x256xbf16>
    %c0_6 = arith.constant 0 : index
    %c0_7 = arith.constant 0 : index
    %10 = vector.load %arg5[%c0_6, %c0_7] : memref<256x256xbf16, #tpu.memory_space<vmem>>, vector<256x256xbf16>
    %cst_8 = arith.constant dense<0.000000e+00> : vector<128x256xf32>
    %11 = tpu.matmul %9, %10, %cst_8 {dimension_numbers = #tpu.dot_dimension_numbers<[1], [0], [0], [1], [0, 0, 1, 1], [], []>} : vector<128x256xbf16>, vector<256x256xbf16>, vector<128x256xf32> -> vector<128x256xf32>
    %c0_9 = arith.constant 0 : index
    %c0_10 = arith.constant 0 : index
    %12 = vector.load %arg6[%c0_9, %c0_10] : memref<1x256xf32, #tpu.memory_space<vmem>>, vector<1x256xf32>
    %13 = vector.broadcast %12 : vector<1x256xf32> to vector<128x256xf32>
    %14 = arith.addf %11, %13 : vector<128x256xf32>
    %c0_11 = arith.constant 0 : index
    %c0_12 = arith.constant 0 : index
    %15 = vector.load %arg12[%c0_11, %c0_12] : memref<128x256xf32, #tpu.memory_space<vmem>>, vector<128x256xf32>
    tpu.vector_store %arg12[%c0_11, %c0_12], %14 {strides = array<i32>} : memref<128x256xf32, #tpu.memory_space<vmem>>, vector<128x256xf32>,
    %16 = vector.extract_strided_slice %14 {offsets = [0, 0], sizes = [128, 128], strides = [1, 1]} : vector<128x256xf32> to vector<128x128xf32>
    %17 = vector.extract_strided_slice %14 {offsets = [0, 128], sizes = [128, 128], strides = [1, 1]} : vector<128x256xf32> to vector<128x128xf32>
    %c0_13 = arith.constant 0 : index
    %c0_14 = arith.constant 0 : index
    %18 = vector.load %arg2[%c0_13, %c0_14] : memref<128x128xf32, #tpu.memory_space<vmem>>, vector<128x128xf32>
    %cst_15 = arith.constant 5.000000e-01 : f32
    %19 = vector.broadcast %cst_15 : f32 to vector<128x128xf32>
    %20 = arith.mulf %19, %17 : vector<128x128xf32>
    %21 = math.exp %20 : vector<128x128xf32>
    %22 = arith.mulf %18, %21 : vector<128x128xf32>
    %23 = arith.addf %16, %22 : vector<128x128xf32>
    %24 = arith.truncf %23 : vector<128x128xf32> to vector<128x128xbf16>
    %c0_16 = arith.constant 0 : index
    %c0_17 = arith.constant 0 : index
    %25 = vector.load %arg7[%c0_16, %c0_17] : memref<128x256xbf16, #tpu.memory_space<vmem>>, vector<128x256xbf16>
    %cst_18 = arith.constant dense<0.000000e+00> : vector<128x256xf32>
    %26 = tpu.matmul %24, %25, %cst_18 {dimension_numbers = #tpu.dot_dimension_numbers<[1], [0], [0], [1], [0, 0, 1, 1], [], []>} : vector<128x128xbf16>, vector<128x256xbf16>, vector<128x256xf32> -> vector<128x256xf32>
    %c0_19 = arith.constant 0 : index
    %c0_20 = arith.constant 0 : index
    %27 = vector.load %arg8[%c0_19, %c0_20] : memref<1x256xf32, #tpu.memory_space<vmem>>, vector<1x256xf32>
    %28 = vector.broadcast %27 : vector<1x256xf32> to vector<128x256xf32>
    %29 = arith.addf %26, %28 : vector<128x256xf32>
    %cst_21 = arith.constant 0.000000e+00 : f32
    %30 = vector.broadcast %cst_21 : f32 to vector<128x256xf32>
    %31 = arith.maximumf %29, %30 : vector<128x256xf32>
    %32 = arith.truncf %31 : vector<128x256xf32> to vector<128x256xbf16>
    %c0_22 = arith.constant 0 : index
    %c0_23 = arith.constant 0 : index
    %33 = vector.load %arg9[%c0_22, %c0_23] : memref<256x128xbf16, #tpu.memory_space<vmem>>, vector<256x128xbf16>
    %cst_24 = arith.constant dense<0.000000e+00> : vector<128x128xf32>
    %34 = tpu.matmul %32, %33, %cst_24 {dimension_numbers = #tpu.dot_dimension_numbers<[1], [0], [0], [1], [0, 0, 1, 1], [], []>} : vector<128x256xbf16>, vector<256x128xbf16>, vector<128x128xf32> -> vector<128x128xf32>
    %c0_25 = arith.constant 0 : index
    %c0_26 = arith.constant 0 : index
    %35 = vector.load %arg10[%c0_25, %c0_26] : memref<1x128xf32, #tpu.memory_space<vmem>>, vector<1x128xf32>
    %36 = vector.broadcast %35 : vector<1x128xf32> to vector<128x128xf32>
    %37 = arith.addf %34, %36 : vector<128x128xf32>
    %38 = arith.negf %37 : vector<128x128xf32>
    %39 = math.exp %38 : vector<128x128xf32>
    %cst_27 = arith.constant 1.000000e+00 : f32
    %40 = vector.broadcast %cst_27 : f32 to vector<128x128xf32>
    %41 = arith.addf %40, %39 : vector<128x128xf32>
    %42 = arith.divf %40, %41 : vector<128x128xf32>
    %c0_28 = arith.constant 0 : index
    %c0_29 = arith.constant 0 : index
    %43 = vector.load %arg11[%c0_28, %c0_29] : memref<128x128xf32, #tpu.memory_space<vmem>>, vector<128x128xf32>
    tpu.vector_store %arg11[%c0_28, %c0_29], %42 {strides = array<i32>} : memref<128x128xf32, #tpu.memory_space<vmem>>, vector<128x128xf32>,
    return
  }
  func.func @transform_0(%arg0: i32) -> (i32, i32) {
    %c0_i32 = arith.constant 0 : i32
    %c0_i32_0 = arith.constant 0 : i32
    return %arg0, %c0_i32 : i32, i32
  }
  func.func @transform_1(%arg0: i32) -> (i32, i32) {
    %c0_i32 = arith.constant 0 : i32
    %c0_i32_0 = arith.constant 0 : i32
    return %arg0, %c0_i32 : i32, i32
  }
  func.func @transform_2(%arg0: i32) -> (i32, i32) {
    %c0_i32 = arith.constant 0 : i32
    %c0_i32_0 = arith.constant 0 : i32
    %c0_i32_1 = arith.constant 0 : i32
    return %c0_i32, %c0_i32_0 : i32, i32
  }
  func.func @transform_3(%arg0: i32) -> (i32, i32) {
    %c0_i32 = arith.constant 0 : i32
    %c0_i32_0 = arith.constant 0 : i32
    %c0_i32_1 = arith.constant 0 : i32
    return %c0_i32, %c0_i32_0 : i32, i32
  }
  func.func @transform_4(%arg0: i32) -> (i32, i32) {
    %c0_i32 = arith.constant 0 : i32
    %c0_i32_0 = arith.constant 0 : i32
    %c0_i32_1 = arith.constant 0 : i32
    return %c0_i32, %c0_i32_0 : i32, i32
  }
  func.func @transform_5(%arg0: i32) -> (i32, i32) {
    %c0_i32 = arith.constant 0 : i32
    %c0_i32_0 = arith.constant 0 : i32
    %c0_i32_1 = arith.constant 0 : i32
    return %c0_i32, %c0_i32_0 : i32, i32
  }
  func.func @transform_6(%arg0: i32) -> (i32, i32) {
    %c0_i32 = arith.constant 0 : i32
    %c0_i32_0 = arith.constant 0 : i32
    %c0_i32_1 = arith.constant 0 : i32
    return %c0_i32, %c0_i32_0 : i32, i32
  }
  func.func @transform_7(%arg0: i32) -> (i32, i32) {
    %c0_i32 = arith.constant 0 : i32
    %c0_i32_0 = arith.constant 0 : i32
    %c0_i32_1 = arith.constant 0 : i32
    return %c0_i32, %c0_i32_0 : i32, i32
  }
  func.func @transform_8(%arg0: i32) -> (i32, i32) {
    %c0_i32 = arith.constant 0 : i32
    %c0_i32_0 = arith.constant 0 : i32
    %c0_i32_1 = arith.constant 0 : i32
    return %c0_i32, %c0_i32_0 : i32, i32
  }
  func.func @transform_9(%arg0: i32) -> (i32, i32) {
    %c0_i32 = arith.constant 0 : i32
    %c0_i32_0 = arith.constant 0 : i32
    %c0_i32_1 = arith.constant 0 : i32
    return %c0_i32, %c0_i32_0 : i32, i32
  }
  func.func @transform_10(%arg0: i32) -> (i32, i32) {
    %c0_i32 = arith.constant 0 : i32
    %c0_i32_0 = arith.constant 0 : i32
    return %arg0, %c0_i32 : i32, i32
  }
  func.func @transform_11(%arg0: i32) -> (i32, i32) {
    %c0_i32 = arith.constant 0 : i32
    %c0_i32_0 = arith.constant 0 : i32
    return %arg0, %c0_i32 : i32, i32
  }
}

</mosaic_0001>

<bundles_post_ra>
// kernel: tpu_custom_call.1
= control target key start
LH: loop header
LB: loop body
LE: loop exit
PB: predicated region body
PF: predicated region fallthrough
CT: control target
= control target key end

     0   :  { %s3686_s0 = inlined_call_operand.hbm [shape: f32[256,128], index: 0, kind: input, shape index: {}]   ;;  %s3687_s1 = inlined_call_operand.hbm [shape: f32[256,128], index: 1, kind: input, shape index: {}]   ;;  %s3688_s2 = inlined_call_operand.hbm [shape: bf16[128,256], index: 2, kind: input, shape index: {}]   ;;  %s3689_s3 = inlined_call_operand.vmem [shape: f32[1,256], index: 3, kind: input, shape index: {}]   ;;  %s3690_s4 = inlined_call_operand.hbm [shape: bf16[256,256], index: 4, kind: input, shape index: {}]   ;;  %s3691_s5 = inlined_call_operand.vmem [shape: f32[1,256], index: 5, kind: input, shape index: {}]   ;;  %s3692_s6 = inlined_call_operand.hbm [shape: bf16[128,256], index: 6, kind: input, shape index: {}]   ;;  %s3693_s7 = inlined_call_operand.vmem [shape: f32[1,256], index: 7, kind: input, shape index: {}]   ;;  %s3694_s8 = inlined_call_operand.hbm [shape: bf16[256,128], index: 8, kind: input, shape index: {}]   ;;  %s3695_s9 = inlined_call_operand.vmem [shape: f32[1,128], index: 9, kind: input, shape index: {}]   ;;  %s3696_s10 = inlined_call_operand.hbm [shape: f32[256,128], index: 10, kind: output, shape index: {0}]   ;;  %s3697_s11 = inlined_call_operand.hbm [shape: f32[256,256], index: 11, kind: output, shape index: {1}]  }
   0x1   :  { %3709 = sst [smem:[#allocation25_spill]] %s3686_s0 }
   0x2   :  { %3710 = sst [smem:[#allocation26_spill]] %s3688_s2 }
   0x3   :  { %3711 = sst [smem:[#allocation27_spill]] %s3690_s4 }
   0x4   :  { %3712 = sst [smem:[#allocation28_spill]] %s3695_s9 }
   0x5   :  { %3713 = sst [smem:[#allocation29_spill]] %s3696_s10 }
   0x6   :  { %3714 = sst [smem:[#allocation30_spill]] %s3697_s11 }
   0x7   :  { %17 = vsyncpa [#allocation3], 0 }
   0x8   :  { %19 = vsyncpa [#allocation3 + $0x1], 0 }
   0x9   :  { %20 = vsyncpa [#allocation6], 0 }
   0xa   :  { %22 = vsyncpa [#allocation6 + $0x1], 0 }
   0xb   :  { %23 = vsyncpa [#allocation9], 0 }
   0xc   :  { %24 = vsyncpa [#allocation12], 0 }
   0xd   :  { %25 = vsyncpa [#allocation4], 0 }
   0xe   :  { %27 = vsyncpa [#allocation4 + $0x1], 0 }
   0xf   :  { %28 = vsyncpa [#allocation15], 0 }
  0x10   :  { %30 = vsyncpa [#allocation15 + $0x1], 0  ;;  %s2972_s17 = smov 0   ;;  %s2974_s18 = smov 0  }
  0x11   :  { %s2976_s19 = smov 0   ;;  %s2978_s20 = smov 0  }
  0x12 LB: > { %3715 = sst [smem:[#allocation23_spill]] %s2881_s17  ;;  %s2993_s21 = sadd.s32 4294967295, %s2893_s20   ;;  %s2893_s20 = sphi %s2978_s20, %s3749_s20   ;;  %s2889_s19 = sphi %s2976_s19, %s3748_s19   ;;  %s2885_s18 = sphi %s2974_s18, %s3747_s18   ;;  %s2881_s17 = sphi %s2972_s17, %s3746_s17  }
  0x13   : > { %s2080_s22 = sadd.s32 4294967294, %s2893_s20   ;;  %p56_p0 = scmp.ne.s32.totalorder %s2885_s18, %s2881_s17 }
  0x14   : > { %p3699_p1 = scmp.eq.s32.totalorder %s2993_s21, 0  ;;  %p280_p3 = scmp.eq.s32.totalorder %s2080_s22, 1 }
  0x15   : > { %p2081_p5 = scmp.ge.s32.totalorder %s2893_s20, 1  ;;  %p313_p7 = scmp.lt.s32.totalorder %s2893_s20, 3 }
  0x16   : > { %p3002_p4 = por %p3699_p1, %p56_p0  ;;  %p3007_p6 = por %p280_p3, %p56_p0 }
  0x17   : > { %p3012_p8 = pnand %p2081_p5, %p313_p7  ;;  %s2895_s26 = smov [#allocation7]  }
  0x18   : > { %s3716_s23 = scalar_select %p3002_p4, 1, 0 }
  0x19   : > { %s3717_s24 = scalar_select %p3007_p6, 1, 0 }
  0x1a   : > { %s3719_s25 = scalar_select %p3012_p8, 1, 0 }
  0x1b   : > { %3718 = sst [smem:[#allocation24_spill]] %s3717_s24  ;;  %s325_s27 = sshll.u32 %s2895_s26, 4  ;;  %s3016_s27 = int_to_ptr.vmem [resolvable:$true] %s325_s27 }
  0x1c   : > { %p2317_p9 = pneg %p3012_p8  ;;  %s2896_s29 = smov [#allocation8]  }
  0x1d   : > { %s341_s30 = sshll.u32 %s2896_s29, 4  ;;  %s2897_s12 = smov [#allocation10]   ;;  %s3027_s30 = int_to_ptr.vmem [resolvable:$true] %s341_s30 }
  0x1e   : > { %p3023_p11 = pnand %p2317_p9, %p3699_p1  ;;  %s3029_s13 = sshll.u32 %s2897_s12, 4  ;;  %s358_s13 = int_to_ptr.vmem [resolvable:$true] %s3029_s13 }
  0x1f   : > { %s3721_s2 = sld [smem:[#allocation26_spill]] }
  0x20   : > { %p3039_p13 = pneg %p3023_p11 }
  0x25   : > { %s2607_s16 = scalar_lea.hbm %s3721_s2, 2048 }
  0x26   : > { %p2608_p12 = scmp.ne.s32.totalorder %s3721_s2, %s2607_s16  ;;  %p2614_p5 = scmp.lt.u32.totalorder %s2607_s16, %s3721_s2 }
  0x28   : > { %p2610_p0 = pnand %p3039_p13, %p2608_p12 }
  0x2a   : > { %p2611_p3 = pneg %p2610_p0 }
  0x2c   : > { %p2616_p7 = pnand %p2614_p5, %p2611_p3 }
  0x2e   : > { %2619 = shalt.err (!%p2616_p7)
}
  0x2f   : > { %s2620_s14 = scalar_lea.vmem %s3016_s27, 2048  ;;  %p2628_p2 = scmp.lt.s32.totalorder %s3016_s27, %s3016_s27 }
  0x30   : > { %p2621_p9 = scmp.ne.s32.totalorder %s3016_s27, %s2620_s14  ;;  %p2629_p6 = scmp.lt.s32.totalorder %s2620_s14, %s2620_s14 }
  0x32   : > { %p2623_p10 = pnand %p2621_p9, %p3039_p13  ;;  %p2630_p12 = por %p2629_p6, %p2628_p2 }
  0x34   : > { %p2624_p1 = pneg %p2623_p10 }
  0x36   : > { %p2631_p0 = pnand %p2630_p12, %p2624_p1 }
  0x38   : > { %2634 = shalt.err (!%p2631_p0)
}
  0x39   : > { %s3705_s15 = smov 128   ;;  %s3707_s16 = smov 8  }
  0x3a   : > { %2320 = dma.hbm_to_vmem [thread:$0]  (!%p3023_p11), %s3721_s2, 2048, %s3016_s27, [#allocation6], %s3705_s15, %s3705_s15, %s3707_s16  }
  0x3b   : > { %s3723_s4 = sld [smem:[#allocation27_spill]] }
  0x41   : > { %s2635_s14 = scalar_lea.hbm %s3723_s4, 4096 }
  0x42   : > { %p2636_p1 = scmp.ne.s32.totalorder %s3723_s4, %s2635_s14  ;;  %p2642_p10 = scmp.lt.u32.totalorder %s2635_s14, %s3723_s4 }
  0x44   : > { %p2638_p2 = pnand %p2636_p1, %p3039_p13 }
  0x46   : > { %p2639_p6 = pneg %p2638_p2 }
  0x48   : > { %p2644_p3 = pnand %p2642_p10, %p2639_p6 }
  0x4a   : > { %2647 = shalt.err (!%p2644_p3)
}
  0x4b   : > { %s2648_s27 = scalar_lea.vmem %s3027_s30, 4096  ;;  %p2656_p12 = scmp.lt.s32.totalorder %s3027_s30, %s3027_s30 }
  0x4c   : > { %p2649_p5 = scmp.ne.s32.totalorder %s3027_s30, %s2648_s27  ;;  %p2657_p0 = scmp.lt.s32.totalorder %s2648_s27, %s2648_s27 }
  0x4e   : > { %p2651_p7 = pnand %p2649_p5, %p3039_p13  ;;  %p2658_p1 = por %p2657_p0, %p2656_p12 }
  0x50   : > { %p2652_p9 = pneg %p2651_p7 }
  0x52   : > { %p2659_p2 = pnand %p2658_p1, %p2652_p9 }
  0x54   : > { %2662 = shalt.err (!%p2659_p2)
}
  0x55   : > { %2323 = dma.hbm_to_vmem [thread:$0]  (!%p3023_p11), %s3723_s4, 4096, %s3027_s30, [#allocation9], %s3705_s15, %s3705_s15, %s3707_s16  }
  0x56   : > { %s2663_s22 = scalar_lea.hbm %s3692_s6, 2048 }
  0x57   : > { %p2664_p6 = scmp.ne.s32.totalorder %s3692_s6, %s2663_s22  ;;  %p2670_p5 = scmp.lt.u32.totalorder %s2663_s22, %s3692_s6 }
  0x59   : > { %p2666_p10 = pnand %p2664_p6, %p3039_p13 }
  0x5b   : > { %p2667_p3 = pneg %p2666_p10 }
  0x5d   : > { %p2672_p7 = pnand %p2670_p5, %p2667_p3 }
  0x5f   : > { %2675 = shalt.err (!%p2672_p7)
}
  0x60   : > { %s2676_s27 = scalar_lea.vmem %s358_s13, 2048  ;;  %p2684_p1 = scmp.lt.s32.totalorder %s358_s13, %s358_s13 }
  0x61   : > { %p2677_p9 = scmp.ne.s32.totalorder %s358_s13, %s2676_s27  ;;  %p2685_p2 = scmp.lt.s32.totalorder %s2676_s27, %s2676_s27 }
  0x63   : > { %p2679_p12 = pnand %p2677_p9, %p3039_p13  ;;  %p2686_p4 = por %p2685_p2, %p2684_p1 }
  0x65   : > { %p2680_p0 = pneg %p2679_p12 }
  0x67   : > { %p2687_p8 = pnand %p2686_p4, %p2680_p0 }
  0x69   : > { %2690 = shalt.err (!%p2687_p8)
}
  0x6a   : > { %2326 = dma.hbm_to_vmem [thread:$0]  (!%p3023_p11), %s3692_s6, 2048, %s358_s13, [#allocation9], %s3705_s15, %s3705_s15, %s3707_s16  }
  0x6b   : > { %s2900_s10 = smov [#allocation11]   ;;  %s2691_s26 = scalar_lea.hbm %s3694_s8, 2048 }
  0x6c   : > { %s373_s11 = sshll.u32 %s2900_s10, 4  ;;  %p2692_p4 = scmp.ne.s32.totalorder %s3694_s8, %s2691_s26  ;;  %s374_s11 = int_to_ptr.vmem [resolvable:$true] %s373_s11 }
  0x6d   : > { %p2698_p10 = scmp.lt.u32.totalorder %s2691_s26, %s3694_s8 }
  0x6e   : > { %p2694_p8 = pnand %p2692_p4, %p3039_p13 }
  0x70   : > { %p2695_p6 = pneg %p2694_p8 }
  0x72   : > { %p2700_p3 = pnand %p2698_p10, %p2695_p6 }
  0x74   : > { %2703 = shalt.err (!%p2700_p3)
}
  0x75   : > { %s2704_s13 = scalar_lea.vmem %s374_s11, 2048  ;;  %p2712_p12 = scmp.lt.s32.totalorder %s374_s11, %s374_s11 }
  0x76   : > { %p2705_p5 = scmp.ne.s32.totalorder %s374_s11, %s2704_s13  ;;  %p2713_p0 = scmp.lt.s32.totalorder %s2704_s13, %s2704_s13 }
  0x78   : > { %p2707_p7 = pnand %p2705_p5, %p3039_p13  ;;  %p2714_p1 = por %p2713_p0, %p2712_p12 }
  0x7a   : > { %p2708_p9 = pneg %p2707_p7 }
  0x7c   : > { %p2715_p2 = pnand %p2714_p1, %p2708_p9 }
  0x7e   : > { %2718 = shalt.err (!%p2715_p2)
}
  0x7f   : > { %s2901_s30 = smov 64   ;;  %s2902_s24 = smov 4  }
  0x80   : > { %2329 = dma.hbm_to_vmem [thread:$0]  (!%p3023_p11), %s3694_s8, 2048, %s374_s11, [#allocation12], %s2901_s30, %s2901_s30, %s2902_s24  }
  0x81   : > { %s3130_s17 = sadd.s32 1, %s2893_s20   ;;  %s43_s26 = sadd.s32 1, %s2889_s19 }
  0x82   : > { %s40_s22 = ssub.s32 %s2893_s20, %s3130_s17  ;;  %p50_p4 = scmp.ne.s32.totalorder %s2889_s19, %s2885_s18 }
  0x83   : > { %p41_p13 = scmp.eq.s32.totalorder %s40_s22, 0  ;;  %p51_p8 = scmp.eq.s32.totalorder %s2893_s20, 0 }
  0x84   : > { %p3724_p10 = scmp.eq.s32.totalorder %s2993_s21, 1  ;;  %p2348_p5 = scmp.lt.s32.totalorder %s2893_s20, 2 }
  0x85   : > { %s3139_s29 = scalar_select %p41_p13, %s2889_s19, %s43_s26  }
  0x86   : > { %p52_p6 = por %p51_p8, %p50_p4  ;;  %p3143_p3 = por %p3724_p10, %p50_p4 }
  0x87   : > { %s390_s28 = sand.u32 1, %s2889_s19   ;;  %s2208_s11 = sshll.u32 %s2893_s20, 11 }
  0x88   : > { %s2087_s14 = sshll.u32 %s390_s28, 7  ;;  %s3726_s0 = sld [smem:[#allocation25_spill]] }
  0x89   : > { %s394_s24 = scalar_lea.vmem [#allocation2], %s2087_s14  ;;  %p3157_p11 = pnand %p2348_p5, %p52_p6 }
  0x8a   : > { %s401_s9 = sshll.u32 %s394_s24, 4  ;;  %s3164_s27 = scalar_lea.hbm %s3687_s1, %s2208_s11  ;;  %s3155_s9 = int_to_ptr.vmem [resolvable:$true] %s401_s9 }
  0x8b   : > { %s415_s13 = scalar_lea.vmem [#allocation5], %s2087_s14  ;;  %s3168_s16 = scalar_lea.sflag [#allocation3], %s390_s28 }
  0x8c   : > { %s3166_s15 = sshll.u32 %s415_s13, 4  ;;  %p2721_p9 = pneg %p3157_p11  ;;  %s3200_s15 = int_to_ptr.vmem [resolvable:$true] %s3166_s15 }
  0x8e   : > { %s3153_s30 = scalar_lea.hbm %s3726_s0, %s2208_s11  ;;  %s2724_s22 = scalar_lea.hbm %s3726_s0, 4096 }
  0x8f   : > { %s2719_s24 = scalar_lea.hbm %s3153_s30, 2048  ;;  %p2725_p1 = scmp.lt.u32.totalorder %s3153_s30, %s3726_s0 }
  0x90   : > { %p2720_p7 = scmp.ne.s32.totalorder %s3153_s30, %s2719_s24  ;;  %p2726_p2 = scmp.lt.u32.totalorder %s2724_s22, %s2719_s24 }
  0x91   : > { %p2728_p4 = scmp.lt.u32.totalorder %s2719_s24, %s3153_s30 }
  0x92   : > { %p2722_p12 = pnand %p2721_p9, %p2720_p7  ;;  %p2727_p13 = por %p2726_p2, %p2725_p1 }
  0x94   : > { %p2723_p0 = pneg %p2722_p12  ;;  %p2729_p8 = por %p2728_p4, %p2727_p13 }
  0x96   : > { %p2730_p6 = pnand %p2729_p8, %p2723_p0 }
  0x98   : > { %2733 = shalt.err (!%p2730_p6)
}
  0x99   : > { %s2734_s28 = scalar_lea.vmem %s3155_s9, 2048  ;;  %s2903_s2 = smov [#allocation2]  }
  0x9a   : > { %p2735_p10 = scmp.ne.s32.totalorder %s3155_s9, %s2734_s28  ;;  %s2739_s4 = sshll.u32 %s2903_s2, 4  ;;  %s2740_s4 = int_to_ptr.vmem [resolvable:$false] %s2739_s4 }
  0x9b   : > { %s2741_s14 = scalar_lea.vmem %s2740_s4, 4096  ;;  %p2742_p12 = scmp.lt.s32.totalorder %s3155_s9, %s2740_s4 }
  0x9c   : > { %p2737_p5 = pnand %p2735_p10, %p2721_p9  ;;  %p2743_p1 = scmp.lt.s32.totalorder %s2741_s14, %s2734_s28 }
  0x9e   : > { %p2738_p7 = pneg %p2737_p5  ;;  %p2744_p2 = por %p2743_p1, %p2742_p12 }
  0xa0   : > { %p2745_p13 = pnand %p2744_p2, %p2738_p7 }
  0xa2   : > { %2748 = shalt.err (!%p2745_p13)
}
  0xa3   : > { %s3728_s13 = smov 8   ;;  %s3729_s24 = smov 128  }
  0xa4   : > { %2333 = dma.hbm_to_vmem [thread:$0]  (!%p3157_p11), %s3153_s30, 2048, %s3155_s9, %s3168_s16, %s3729_s24, %s3729_s24, %s3728_s13  }
  0xa5   : > { %s411_s22 = sand.u32 1, %s2893_s20   ;;  %s2749_s11 = scalar_lea.hbm %s3164_s27, 2048 }
  0xa6   : > { %s3203_s26 = scalar_lea.sflag [#allocation6], %s411_s22  ;;  %p2750_p0 = scmp.ne.s32.totalorder %s3164_s27, %s2749_s11 }
  0xa7   : > { %s2754_s4 = scalar_lea.hbm %s3687_s1, 4096  ;;  %p2755_p6 = scmp.lt.u32.totalorder %s3164_s27, %s3687_s1 }
  0xa8   : > { %p2752_p4 = pnand %p2750_p0, %p2721_p9  ;;  %p2756_p10 = scmp.lt.u32.totalorder %s2754_s4, %s2749_s11 }
  0xa9   : > { %p2758_p7 = scmp.lt.u32.totalorder %s2749_s11, %s3164_s27 }
  0xaa   : > { %p2753_p8 = pneg %p2752_p4  ;;  %p2757_p5 = por %p2756_p10, %p2755_p6 }
  0xac   : > { %p2759_p12 = por %p2758_p7, %p2757_p5 }
  0xae   : > { %p2760_p1 = pnand %p2759_p12, %p2753_p8 }
  0xb0   : > { %2763 = shalt.err (!%p2760_p1)
}
  0xb1   : > { %s2764_s16 = scalar_lea.vmem %s3200_s15, 2048  ;;  %s2904_s30 = smov [#allocation5]  }
  0xb2   : > { %p2765_p2 = scmp.ne.s32.totalorder %s3200_s15, %s2764_s16  ;;  %s2769_s9 = sshll.u32 %s2904_s30, 4  ;;  %s2770_s9 = int_to_ptr.vmem [resolvable:$false] %s2769_s9 }
  0xb3   : > { %s2771_s0 = scalar_lea.vmem %s2770_s9, 4096  ;;  %p2772_p4 = scmp.lt.s32.totalorder %s3200_s15, %s2770_s9 }
  0xb4   : > { %p2767_p13 = pnand %p2765_p2, %p2721_p9  ;;  %p2773_p6 = scmp.lt.s32.totalorder %s2771_s0, %s2764_s16 }
  0xb6   : > { %p2768_p0 = pneg %p2767_p13  ;;  %p2774_p10 = por %p2773_p6, %p2772_p4 }
  0xb8   : > { %p2775_p5 = pnand %p2774_p10, %p2768_p0 }
  0xba   : > { %2778 = shalt.err (!%p2775_p5)
}
  0xbb   : > { %2336 = dma.hbm_to_vmem [thread:$0]  (!%p3157_p11), %s3164_s27, 2048, %s3200_s15, %s3203_s26, %s3729_s24, %s3729_s24, %s3728_s13  }
  0xbc   : > { %p3730_p9 = scmp.ne.s32.totalorder %s3719_s25, 0 }
  0xbd   : > { %s3235_s22 = sand.u32 (!%p3730_p9), 1, %s2885_s18   ;;  %p3731_p8 = scmp.ne.s32.totalorder (!%p3730_p9), %s3716_s23, 0 }
  0xbe   : > { %434 = sbr.rel (%p3730_p9) target bundleno = 1242 (0x4da), region = 60  ;;  %s3238_s11 = sshll.u32 (!%p3730_p9), %s3235_s22, 7 }
  0xbf   : > { %s437_s10 = scalar_lea.sflag (!%p3730_p9), [#allocation3], %s3235_s22  ;;  %s3242_s28 = scalar_lea.vmem (!%p3730_p9), [#allocation2], %s3238_s11 }
  0xc5   : > { %2852 = dma.done.wait (%p3731_p8), %s437_s10, 2048  }
  0xc6   : > { %2854 = vsyncadd (%p3731_p8), %s437_s10, 4294965248  ;;  %s445_s25 = sand.u32 1, %s2993_s21   ;;  %s3250_s27 = scalar_lea.vmem [#allocation5], %s3238_s11 }
  0xc7   : > { %s446_s15 = scalar_lea.sflag [#allocation6], %s445_s25 }
  0xc8   : > { %2856 = dma.done.wait (%p3731_p8), %s446_s15, 2048  }
  0xc9   : > { %2858 = vsyncadd (%p3731_p8), %s446_s15, 4294965248  ;;  %p3732_p11 = scmp.eq.s32.totalorder %s2993_s21, 0 }
  0xcb   : > { %2860 = dma.done.wait (%p3732_p11), [#allocation6], 2048   ;;  %p3733_p7 = pmov %p3732_p11 }
  0xcd   : > { %2862 = vsyncadd (%p3733_p7), [#allocation6], 4294965248  ;;  %p3734_p12 = pmov %p3733_p7 }
  0xce   : > { %p3735_p1 = pmov %p3733_p7 }
  0xcf   : > { %2864 = dma.done.wait (%p3734_p12), [#allocation9], 6144  }
  0xd0   : > { %2866 = vsyncadd (%p3735_p1), [#allocation9], 4294961152  ;;  %p3736_p2 = pmov %p3735_p1 }
  0xd1   : > { %p3737_p13 = pmov %p3735_p1 }
  0xd2   : > { %2868 = dma.done.wait (%p3736_p2), [#allocation12], 2048  }
  0xd3   : > { %2870 = vsyncadd (%p3737_p13), [#allocation12], 4294965248  ;;  %v2905_v0 = vmov 0   ;;  %v2399_v1 = vld [vmem:[#allocation7 + $0x4] ss:$8 sps:$4 sm:$0xff]   ;;  %v521_v31 = vld [vmem:[%s3242_s28 + $0x10] sm:$0xff] }
  0xd4   : > { %683 = vmatprep.mubr.bf16.mxu0 %v2905_v0  ;;  %v2401_v2 = vld [vmem:[#allocation7] ss:$8 sps:$4 sm:$0xff]   ;;  %651 = vmatprep.subr.bf16.mxu0 %v2399_v1  ;;  %v2402_v3 = vld [vmem:[#allocation7 + $0x14] ss:$8 sps:$4 sm:$0xff]   ;;  %v2404_v4 = vld [vmem:[#allocation7 + $0x10] ss:$8 sps:$4 sm:$0xff]  }
  0xd5   : > { %652 = vmatpush1.bf16.msra.mxu0 %v2401_v2  ;;  %v2405_v5 = vld [vmem:[#allocation7 + $0x24] ss:$8 sps:$4 sm:$0xff]   ;;  %v2407_v6 = vld [vmem:[#allocation7 + $0x20] ss:$8 sps:$4 sm:$0xff]   ;;  %v2408_v7 = vld [vmem:[#allocation7 + $0x34] ss:$8 sps:$4 sm:$0xff]  }
  0xd6   : > { %653 = vmatprep.subr.bf16.mxu0 %v2402_v3  ;;  %v2410_v8 = vld [vmem:[#allocation7 + $0x30] ss:$8 sps:$4 sm:$0xff]   ;;  %v2411_v9 = vld [vmem:[#allocation7 + $0x44] ss:$8 sps:$4 sm:$0xff]   ;;  %v2413_v10 = vld [vmem:[#allocation7 + $0x40] ss:$8 sps:$4 sm:$0xff]  }
  0xd7   : > { %v2414_v11 = vld [vmem:[#allocation7 + $0x54] ss:$8 sps:$4 sm:$0xff]   ;;  %v2423_v12 = vld [vmem:[#allocation8 + $0x4] ss:$8 sps:$4 sm:$0xff]   ;;  %v2425_v13 = vld [vmem:[#allocation8] ss:$8 sps:$4 sm:$0xff]  }
  0xd8   : > { %v2416_v14 = vld [vmem:[#allocation7 + $0x50] ss:$8 sps:$4 sm:$0xff]   ;;  %1016 = vmatprep.subr.bf16.mxu1 %v2423_v12  ;;  %v2426_v15 = vld [vmem:[#allocation8 + $0x14] ss:$8 sps:$4 sm:$0xff]   ;;  %v2417_v16 = vld [vmem:[#allocation7 + $0x64] ss:$8 sps:$4 sm:$0xff]  }
  0xd9   : > { %654 = vmatpush1.bf16.msra.mxu0 %v2404_v4  ;;  %1017 = vmatpush1.bf16.msra.mxu1 %v2425_v13  ;;  %v2428_v17 = vld [vmem:[#allocation8 + $0x10] ss:$8 sps:$4 sm:$0xff]   ;;  %v2429_v18 = vld [vmem:[#allocation8 + $0x24] ss:$8 sps:$4 sm:$0xff]   ;;  %v2419_v19 = vld [vmem:[#allocation7 + $0x60] ss:$8 sps:$4 sm:$0xff]  }
  0xda   : > { %655 = vmatprep.subr.bf16.mxu0 %v2405_v5  ;;  %1018 = vmatprep.subr.bf16.mxu1 %v2426_v15  ;;  %v2420_v20 = vld [vmem:[#allocation7 + $0x74] ss:$8 sps:$4 sm:$0xff]   ;;  %v2431_v21 = vld [vmem:[#allocation8 + $0x20] ss:$8 sps:$4 sm:$0xff]   ;;  %v2422_v23 = vld [vmem:[#allocation7 + $0x70] ss:$8 sps:$4 sm:$0xff]  }
  0xdb   : > { %v2432_v22 = vld [vmem:[#allocation8 + $0x34] ss:$8 sps:$4 sm:$0xff]   ;;  %v519_v24 = vld [vmem:[%s3242_s28] sm:$0xff]  ;;  %v520_v25 = vld [vmem:[%s3242_s28 + $0x8] sm:$0xff]  ;;  %s2101_s2 = sshll.u32 %s3235_s22, 8  ;;  %s2212_s30 = sshll.u32 %s2993_s21, 12 }
  0xdc   : > { %v2434_v26 = vld [vmem:[#allocation8 + $0x30] ss:$8 sps:$4 sm:$0xff]   ;;  %v2435_v27 = vld [vmem:[#allocation8 + $0x44] ss:$8 sps:$4 sm:$0xff]   ;;  %v535_v28 = vpack.c.bf16 %v520_v25, %v519_v24  ;;  %v2437_v29 = vld [vmem:[#allocation8 + $0x40] ss:$8 sps:$4 sm:$0xff]  }
  0xdd   : > { %656 = vmatpush1.bf16.msra.mxu0 %v2407_v6  ;;  %1019 = vmatpush1.bf16.msra.mxu1 %v2428_v17  ;;  %v2438_v30 = vld [vmem:[#allocation8 + $0x54] ss:$8 sps:$4 sm:$0xff]   ;;  %v2440_v33 = vld [vmem:[#allocation8 + $0x50] ss:$8 sps:$4 sm:$0xff]   ;;  %v2441_v34 = vld [vmem:[#allocation8 + $0x64] ss:$8 sps:$4 sm:$0xff]  }
  0xde   : > { %657 = vmatprep.subr.bf16.mxu0 %v2408_v7  ;;  %1020 = vmatprep.subr.bf16.mxu1 %v2429_v18  ;;  %v522_v32 = vld [vmem:[%s3242_s28 + $0x18] sm:$0xff]  ;;  %v2443_v35 = vld [vmem:[#allocation8 + $0x60] ss:$8 sps:$4 sm:$0xff]   ;;  %v2447_v41 = vld [vmem:[#allocation8 + $0x84] ss:$8 sps:$4 sm:$0xff]   ;;  %s3380_s4 = scalar_lea.vmem [#allocation14], %s2101_s2 }
  0xdf   : > { %v536_v36 = vpack.c.bf16 %v522_v32, %v521_v31  ;;  %v2444_v37 = vld [vmem:[#allocation8 + $0x74] ss:$8 sps:$4 sm:$0xff]   ;;  %v523_v38 = vld [vmem:[%s3242_s28 + $0x20] sm:$0xff]  ;;  %v524_v39 = vld [vmem:[%s3242_s28 + $0x28] sm:$0xff]  ;;  %s1914_s9 = sshll.u32 %s3380_s4, 4  ;;  %s1884_s15 = scalar_lea.sflag [#allocation15], %s3235_s22  ;;  %s3569_s9 = int_to_ptr.vmem [resolvable:$true] %s1914_s9 }
  0xe0   : > { %v2446_v40 = vld [vmem:[#allocation8 + $0x70] ss:$8 sps:$4 sm:$0xff]   ;;  %v2449_v42 = vld [vmem:[#allocation8 + $0x80] ss:$8 sps:$4 sm:$0xff]   ;;  %v537_v43 = vpack.c.bf16 %v524_v39, %v523_v38  ;;  %v2450_v44 = vld [vmem:[#allocation8 + $0x94] ss:$8 sps:$4 sm:$0xff]  }
  0xe1   : > { %658 = vmatpush1.bf16.msra.mxu0 %v2410_v8  ;;  %1021 = vmatpush1.bf16.msra.mxu1 %v2431_v21  ;;  %v525_v45 = vld [vmem:[%s3242_s28 + $0x30] sm:$0xff]  ;;  %v526_v46 = vld [vmem:[%s3242_s28 + $0x38] sm:$0xff]  ;;  %v2453_v48 = vld [vmem:[#allocation8 + $0xa4] ss:$8 sps:$4 sm:$0xff]   ;;  %s2906_s23 = smov [#allocation14]  }
  0xe2   : > { %659 = vmatprep.subr.bf16.mxu0 %v2411_v9  ;;  %1022 = vmatprep.subr.bf16.mxu1 %v2432_v22  ;;  %v2452_v47 = vld [vmem:[#allocation8 + $0x90] ss:$8 sps:$4 sm:$0xff]   ;;  %v538_v49 = vpack.c.bf16 %v526_v46, %v525_v45  ;;  %v2455_v50 = vld [vmem:[#allocation8 + $0xa0] ss:$8 sps:$4 sm:$0xff]   ;;  %v2456_v51 = vld [vmem:[#allocation8 + $0xb4] ss:$8 sps:$4 sm:$0xff]  }
  0xe3   : > { %v527_v52 = vld [vmem:[%s3242_s28 + $0x40] sm:$0xff]  ;;  %v528_v53 = vld [vmem:[%s3242_s28 + $0x48] sm:$0xff]  ;;  %v2458_v54 = vld [vmem:[#allocation8 + $0xb0] ss:$8 sps:$4 sm:$0xff]   ;;  %s2783_s13 = sshll.u32 %s2906_s23, 4  ;;  %s2784_s13 = int_to_ptr.vmem [resolvable:$false] %s2783_s13 }
  0xe4   : > { %v2459_v55 = vld [vmem:[#allocation8 + $0xc4] ss:$8 sps:$4 sm:$0xff]   ;;  %v539_v56 = vpack.c.bf16 %v528_v53, %v527_v52  ;;  %v2461_v57 = vld [vmem:[#allocation8 + $0xc0] ss:$8 sps:$4 sm:$0xff]   ;;  %v2462_v58 = vld [vmem:[#allocation8 + $0xd4] ss:$8 sps:$4 sm:$0xff]   ;;  %p2786_p10 = scmp.lt.s32.totalorder %s3569_s9, %s2784_s13 }
  0xe5   : > { %660 = vmatpush1.bf16.msra.mxu0 %v2413_v10  ;;  %1023 = vmatpush1.bf16.msra.mxu1 %v2434_v26  ;;  %v529_v59 = vld [vmem:[%s3242_s28 + $0x50] sm:$0xff]  ;;  %v530_v60 = vld [vmem:[%s3242_s28 + $0x58] sm:$0xff]  ;;  %v531_v62 = vld [vmem:[%s3242_s28 + $0x60] sm:$0xff]  ;;  %s2785_s24 = scalar_lea.vmem %s2784_s13, 8192 }
  0xe6   : > { %661 = vmatprep.subr.bf16.mxu0 %v2414_v11  ;;  %1024 = vmatprep.subr.bf16.mxu1 %v2435_v27  ;;  %v540_v61 = vpack.c.bf16 %v530_v60, %v529_v59  ;;  %v532_v63 = vld [vmem:[%s3242_s28 + $0x68] sm:$0xff]  ;;  %v533_v2 = vld [vmem:[%s3242_s28 + $0x70] sm:$0xff]  ;;  %v534_v3 = vld [vmem:[%s3242_s28 + $0x78] sm:$0xff]  ;;  %s3738_s28 = sld [smem:[#allocation30_spill]] }
  0xe7   : > { %v541_v1 = vpack.c.bf16 %v532_v63, %v531_v62  ;;  %v542_v4 = vpack.c.bf16 %v534_v3, %v533_v2  ;;  %v2464_v5 = vld [vmem:[#allocation8 + $0xd0] ss:$8 sps:$4 sm:$0xff]   ;;  %v2465_v6 = vld [vmem:[#allocation8 + $0xe4] ss:$8 sps:$4 sm:$0xff]   ;;  %v2467_v7 = vld [vmem:[#allocation8 + $0xe0] ss:$8 sps:$4 sm:$0xff]  }
  0xe8   : > { %v2468_v8 = vld [vmem:[#allocation8 + $0xf4] ss:$8 sps:$4 sm:$0xff]   ;;  %v2470_v9 = vld [vmem:[#allocation8 + $0xf0] ss:$8 sps:$4 sm:$0xff]   ;;  %v2471_v10 = vld [vmem:[#allocation10] ss:$8 sps:$4 sm:$0xff]  }
  0xe9   : > { %662 = vmatpush1.bf16.msra.mxu0 %v2416_v14  ;;  %1025 = vmatpush1.bf16.msra.mxu1 %v2437_v29  ;;  %v2473_v11 = vld [vmem:[#allocation10 + $0x4] ss:$8 sps:$4 sm:$0xff]   ;;  %v2476_v12 = vld [vmem:[#allocation10 + $0x14] ss:$8 sps:$4 sm:$0xff]   ;;  %v2474_v13 = vld [vmem:[#allocation10 + $0x10] ss:$8 sps:$4 sm:$0xff]  }
  0xea   : > { %663 = vmatprep.subr.bf16.mxu0 %v2417_v16  ;;  %1026 = vmatprep.subr.bf16.mxu1 %v2438_v30  ;;  %v2479_v14 = vld [vmem:[#allocation10 + $0x24] ss:$8 sps:$4 sm:$0xff]   ;;  %v2477_v15 = vld [vmem:[#allocation10 + $0x20] ss:$8 sps:$4 sm:$0xff]   ;;  %v2482_v16 = vld [vmem:[#allocation10 + $0x34] ss:$8 sps:$4 sm:$0xff]  }
  0xeb   : > { %v2480_v17 = vld [vmem:[#allocation10 + $0x30] ss:$8 sps:$4 sm:$0xff]   ;;  %v2485_v18 = vld [vmem:[#allocation10 + $0x44] ss:$8 sps:$4 sm:$0xff]  }
  0xec   : > { %s3567_s25 = scalar_lea.hbm %s3738_s28, %s2212_s30 }
  0xed   : > { %664 = vmatpush1.bf16.msra.mxu0 %v2419_v19  ;;  %1027 = vmatpush1.bf16.msra.mxu1 %v2440_v33  ;;  %v2483_v19 = vld [vmem:[#allocation10 + $0x40] ss:$8 sps:$4 sm:$0xff]  }
  0xee   : > { %665 = vmatprep.subr.bf16.mxu0 %v2420_v20  ;;  %1028 = vmatprep.subr.bf16.mxu1 %v2441_v34  ;;  %v561_v20 = vlaneseq }
  0xf0   : > { %v562_v21 = vshrl.u32 %v561_v20, 7 }
  0xf1   : > { %666 = vmatpush1.bf16.msra.mxu0 %v2422_v23  ;;  %1029 = vmatpush1.bf16.msra.mxu1 %v2443_v35  ;;  %v559_v23 = vld [vmem:[%s3689_s3] sm:$0x3] }
  0xf2   : > { %1030 = vmatprep.subr.bf16.mxu1 %v2444_v37  ;;  %1373 = vmatprep.subr.bf16.mxu0 %v2473_v11  ;;  %v3293_v22 = vsub.s32 0, %v562_v21  ;;  %v3298_v24 = vsub.s32 1, %v562_v21 }
  0xf4   : > { %684 = vmatmul.mubr.bf16.vlgmr.msra.gmra.mrb[0].mxu0 %v535_v28  ;;  %v3301_v25 = vrot.slane %v559_v23, %v3293_v22  ;;  %v3304_v26 = vrot.slane %v559_v23, %v3298_v24 }
  0xf5   : > { %693 = vmatprep.mubr.bf16.mxu0 %v2905_v0  ;;  %1031 = vmatpush1.bf16.msra.mxu1 %v2446_v40 }
  0xf6   : > { %1032 = vmatprep.subr.bf16.mxu1 %v2447_v41  ;;  %1374 = vmatpush1.bf16.msra.mxu0 %v2471_v10 }
  0xf7   : > { %1375 = vmatprep.subr.bf16.mxu0 %v2476_v12 }
  0xf9   : > { %1033 = vmatpush1.bf16.msra.mxu1 %v2449_v42 }
  0xfa   : > { %1034 = vmatprep.subr.bf16.mxu1 %v2450_v44  ;;  %1376 = vmatpush1.bf16.msra.mxu0 %v2474_v13 }
  0xfb   : > { %1377 = vmatprep.subr.bf16.mxu0 %v2479_v14 }
  0xfc   : > { %694 = vmatmul.mubr.bf16.gmra.mrb[4].mxu0 %v536_v36 }
  0xfd   : > { %703 = vmatprep.mubr.bf16.mxu0 %v2905_v0  ;;  %1035 = vmatpush1.bf16.msra.mxu1 %v2452_v47 }
  0xfe   : > { %1036 = vmatprep.subr.bf16.mxu1 %v2453_v48  ;;  %1378 = vmatpush1.bf16.msra.mxu0 %v2477_v15 }
  0xff   : > { %1379 = vmatprep.subr.bf16.mxu0 %v2482_v16 }
 0x101   : > { %1037 = vmatpush1.bf16.msra.mxu1 %v2455_v50 }
 0x102   : > { %1038 = vmatprep.subr.bf16.mxu1 %v2456_v51  ;;  %1380 = vmatpush1.bf16.msra.mxu0 %v2480_v17 }
 0x103   : > { %1381 = vmatprep.subr.bf16.mxu0 %v2485_v18 }
 0x104   : > { %704 = vmatmul.mubr.bf16.gmra.mrb[8].mxu0 %v537_v43 }
 0x105   : > { %713 = vmatprep.mubr.bf16.mxu0 %v2905_v0  ;;  %1039 = vmatpush1.bf16.msra.mxu1 %v2458_v54 }
 0x106   : > { %1040 = vmatprep.subr.bf16.mxu1 %v2459_v55  ;;  %1382 = vmatpush1.bf16.msra.mxu0 %v2483_v19 }
 0x109   : > { %1041 = vmatpush1.bf16.msra.mxu1 %v2461_v57 }
 0x10a   : > { %1042 = vmatprep.subr.bf16.mxu1 %v2462_v58 }
 0x10c   : > { %714 = vmatmul.mubr.bf16.gmra.mrb[12].mxu0 %v538_v49 }
 0x10d   : > { %723 = vmatprep.mubr.bf16.mxu0 %v2905_v0  ;;  %1043 = vmatpush1.bf16.msra.mxu1 %v2464_v5 }
 0x10e   : > { %1044 = vmatprep.subr.bf16.mxu1 %v2465_v6 }
 0x111   : > { %1045 = vmatpush1.bf16.msra.mxu1 %v2467_v7 }
 0x112   : > { %1046 = vmatprep.subr.bf16.mxu1 %v2468_v8 }
 0x114   : > { %724 = vmatmul.mubr.bf16.gmra.mrb[16].mxu0 %v539_v56 }
 0x115   : > { %733 = vmatprep.mubr.bf16.mxu0 %v2905_v0  ;;  %1047 = vmatpush1.bf16.msra.mxu1 %v2470_v9 }
 0x11c   : > { %734 = vmatmul.mubr.bf16.gmra.mrb[20].mxu0 %v540_v61 }
 0x11d   : > { %743 = vmatprep.mubr.bf16.mxu0 %v2905_v0 }
 0x124   : > { %744 = vmatmul.mubr.bf16.gmra.mrb[24].mxu0 %v541_v1 }
 0x125   : > { %753 = vmatprep.mubr.bf16.mxu0 %v2905_v0 }
 0x12c   : > { %754 = vmatmul.mubr.bf16.gmra.mrb[28].mxu0 %v542_v4 }
 0x12d   : > { %1405 = vmatprep.mubr.bf16.mxu0 %v2905_v0 }
 0x1c7   : > { %v685_v27 = vpop.f32.mrb[0].mxu0 }
 0x1c8   : > { %v686_v28 = vadd.f32 %v685_v27, %v3301_v25  ;;  %v687_v29 = vpop.f32.mrb[1].mxu0 }
 0x1c9   : > { %v688_v30 = vadd.f32 %v687_v29, %v3304_v26  ;;  %v689_v31 = vpop.f32.mrb[2].mxu0 }
 0x1ca   : > { %v690_v32 = vadd.f32 %v689_v31, %v3301_v25  ;;  %v691_v33 = vpop.f32.mrb[3].mxu0  ;;  %v764_v35 = vmax.f32 %v686_v28, 0.0 }
 0x1cb   : > { %v692_v34 = vadd.f32 %v691_v33, %v3304_v26  ;;  %v765_v37 = vmax.f32 %v688_v30, 0.0 }
 0x1cc   : > { %v766_v36 = vmax.f32 %v690_v32, 0.0 }
 0x1cd   : > { %v767_v38 = vmax.f32 %v692_v34, 0.0 }
 0x1ce   : > { %v796_v39 = vpack.c.bf16 %v766_v36, %v764_v35 }
 0x1cf   : > { %v695_v40 = vpop.f32.mrb[4].mxu0  ;;  %v797_v41 = vpack.c.bf16 %v767_v38, %v765_v37 }
 0x1d0   : > { %v696_v42 = vadd.f32 %v695_v40, %v3301_v25  ;;  %v697_v43 = vpop.f32.mrb[5].mxu0 }
 0x1d1   : > { %v698_v44 = vadd.f32 %v697_v43, %v3304_v26  ;;  %v699_v45 = vpop.f32.mrb[6].mxu0  ;;  %1048 = vmatprep.mubr.bf16.mxu1 %v797_v41 }
 0x1d2   : > { %v700_v46 = vadd.f32 %v699_v45, %v3301_v25  ;;  %v701_v47 = vpop.f32.mrb[7].mxu0  ;;  %1049 = vmatmul.mubr.bf16.vlgmr.msra.gmra.mrb[0].mxu1 %v796_v39  ;;  %v768_v49 = vmax.f32 %v696_v42, 0.0 }
 0x1d3   : > { %v702_v48 = vadd.f32 %v701_v47, %v3304_v26  ;;  %v769_v51 = vmax.f32 %v698_v44, 0.0 }
 0x1d4   : > { %v770_v50 = vmax.f32 %v700_v46, 0.0 }
 0x1d5   : > { %v771_v52 = vmax.f32 %v702_v48, 0.0 }
 0x1d6   : > { %v798_v53 = vpack.c.bf16 %v770_v50, %v768_v49 }
 0x1d7   : > { %v799_v54 = vpack.c.bf16 %v771_v52, %v769_v51  ;;  %v705_v55 = vpop.f32.mrb[8].mxu0 }
 0x1d8   : > { %v706_v56 = vadd.f32 %v705_v55, %v3301_v25  ;;  %v707_v57 = vpop.f32.mrb[9].mxu0 }
 0x1d9   : > { %v708_v58 = vadd.f32 %v707_v57, %v3304_v26  ;;  %v709_v59 = vpop.f32.mrb[10].mxu0  ;;  %1058 = vmatprep.mubr.bf16.mxu1 %v799_v54 }
 0x1da   : > { %v710_v60 = vadd.f32 %v709_v59, %v3301_v25  ;;  %v711_v61 = vpop.f32.mrb[11].mxu0  ;;  %1059 = vmatmul.mubr.bf16.gmra.mrb[4].mxu1 %v798_v53  ;;  %v772_v63 = vmax.f32 %v706_v56, 0.0 }
 0x1db   : > { %v712_v62 = vadd.f32 %v711_v61, %v3304_v26  ;;  %v773_v2 = vmax.f32 %v708_v58, 0.0 }
 0x1dc   : > { %v774_v1 = vmax.f32 %v710_v60, 0.0 }
 0x1dd   : > { %v775_v3 = vmax.f32 %v712_v62, 0.0 }
 0x1de   : > { %v800_v4 = vpack.c.bf16 %v774_v1, %v772_v63 }
 0x1df   : > { %v801_v5 = vpack.c.bf16 %v775_v3, %v773_v2  ;;  %v715_v6 = vpop.f32.mrb[12].mxu0 }
 0x1e0   : > { %v716_v7 = vadd.f32 %v715_v6, %v3301_v25  ;;  %v717_v8 = vpop.f32.mrb[13].mxu0 }
 0x1e1   : > { %v718_v9 = vadd.f32 %v717_v8, %v3304_v26  ;;  %v719_v10 = vpop.f32.mrb[14].mxu0  ;;  %1068 = vmatprep.mubr.bf16.mxu1 %v801_v5 }
 0x1e2   : > { %v720_v11 = vadd.f32 %v719_v10, %v3301_v25  ;;  %v721_v12 = vpop.f32.mrb[15].mxu0  ;;  %1069 = vmatmul.mubr.bf16.gmra.mrb[8].mxu1 %v800_v4  ;;  %v776_v14 = vmax.f32 %v716_v7, 0.0 }
 0x1e3   : > { %v722_v13 = vadd.f32 %v721_v12, %v3304_v26  ;;  %v777_v16 = vmax.f32 %v718_v9, 0.0 }
 0x1e4   : > { %v778_v15 = vmax.f32 %v720_v11, 0.0 }
 0x1e5   : > { %v779_v17 = vmax.f32 %v722_v13, 0.0 }
 0x1e6   : > { %v802_v18 = vpack.c.bf16 %v778_v15, %v776_v14 }
 0x1e7   : > { %v803_v19 = vpack.c.bf16 %v779_v17, %v777_v16  ;;  %v725_v20 = vpop.f32.mrb[16].mxu0  ;;  %v2488_v17 = vld [vmem:[#allocation10 + $0x54] ss:$8 sps:$4 sm:$0xff]  }
 0x1e8   : > { %v726_v21 = vadd.f32 %v725_v20, %v3301_v25  ;;  %v727_v23 = vpop.f32.mrb[17].mxu0  ;;  %1383 = vmatprep.subr.bf16.mxu0 %v2488_v17  ;;  %v2489_v20 = vld [vmem:[#allocation10 + $0x60] ss:$8 sps:$4 sm:$0xff]  }
 0x1e9   : > { %v728_v27 = vadd.f32 %v727_v23, %v3304_v26  ;;  %v729_v28 = vpop.f32.mrb[18].mxu0  ;;  %1078 = vmatprep.mubr.bf16.mxu1 %v803_v19  ;;  %v2491_v19 = vld [vmem:[#allocation10 + $0x64] ss:$8 sps:$4 sm:$0xff]  }
 0x1ea   : > { %v730_v29 = vadd.f32 %v729_v28, %v3301_v25  ;;  %v731_v30 = vpop.f32.mrb[19].mxu0  ;;  %1079 = vmatmul.mubr.bf16.gmra.mrb[12].mxu1 %v802_v18  ;;  %v780_v32 = vmax.f32 %v726_v21, 0.0  ;;  %v2486_v18 = vld [vmem:[#allocation10 + $0x50] ss:$8 sps:$4 sm:$0xff]   ;;  %v3338_v23 = vld [vmem:[#allocation11] sm:$0xff]   ;;  %v3344_v28 = vld [vmem:[#allocation11 + $0x8] sm:$0xff]  }
 0x1eb   : > { %v732_v31 = vadd.f32 %v731_v30, %v3304_v26  ;;  %v781_v34 = vmax.f32 %v728_v27, 0.0  ;;  %1384 = vmatpush1.bf16.msra.mxu0 %v2486_v18  ;;  %v2492_v21 = vld [vmem:[#allocation10 + $0x70] ss:$8 sps:$4 sm:$0xff]   ;;  %v3340_v27 = vld [vmem:[#allocation11 + $0x48] sm:$0xff]  }
 0x1ec   : > { %v782_v33 = vmax.f32 %v730_v29, 0.0  ;;  %1385 = vmatprep.subr.bf16.mxu0 %v2491_v19  ;;  %v3346_v29 = vld [vmem:[#allocation11 + $0x50] sm:$0xff]  }
 0x1ed   : > { %v783_v35 = vmax.f32 %v732_v31, 0.0  ;;  %v3350_v30 = vld [vmem:[#allocation11 + $0x10] sm:$0xff]   ;;  %v3352_v31 = vld [vmem:[#allocation11 + $0x58] sm:$0xff]  }
 0x1ee   : > { %v804_v36 = vpack.c.bf16 %v782_v33, %v780_v32  ;;  %v3356_v32 = vld [vmem:[#allocation11 + $0x18] sm:$0xff]   ;;  %v3358_v33 = vld [vmem:[#allocation11 + $0x60] sm:$0xff]  }
 0x1ef   : > { %v805_v37 = vpack.c.bf16 %v783_v35, %v781_v34  ;;  %v735_v38 = vpop.f32.mrb[20].mxu0  ;;  %1386 = vmatpush1.bf16.msra.mxu0 %v2489_v20  ;;  %v3362_v34 = vld [vmem:[#allocation11 + $0x20] sm:$0xff]   ;;  %v3364_v35 = vld [vmem:[#allocation11 + $0x68] sm:$0xff]  }
 0x1f0   : > { %v736_v39 = vadd.f32 %v735_v38, %v3301_v25  ;;  %v737_v40 = vpop.f32.mrb[21].mxu0 }
 0x1f1   : > { %v738_v41 = vadd.f32 %v737_v40, %v3304_v26  ;;  %v739_v42 = vpop.f32.mrb[22].mxu0  ;;  %1088 = vmatprep.mubr.bf16.mxu1 %v805_v37 }
 0x1f2   : > { %v740_v43 = vadd.f32 %v739_v42, %v3301_v25  ;;  %v741_v44 = vpop.f32.mrb[23].mxu0  ;;  %1089 = vmatmul.mubr.bf16.gmra.mrb[16].mxu1 %v804_v36  ;;  %v784_v46 = vmax.f32 %v736_v39, 0.0  ;;  %v844_v36 = vld [vmem:[%s3691_s5] sm:$0x3] }
 0x1f3   : > { %v742_v45 = vadd.f32 %v741_v44, %v3304_v26  ;;  %v785_v48 = vmax.f32 %v738_v41, 0.0  ;;  %v3373_v37 = vrot.slane %v844_v36, %v3293_v22  ;;  %v3376_v38 = vrot.slane %v844_v36, %v3298_v24 }
 0x1f4   : > { %v786_v47 = vmax.f32 %v740_v43, 0.0 }
 0x1f5   : > { %v787_v49 = vmax.f32 %v742_v45, 0.0 }
 0x1f6   : > { %v806_v50 = vpack.c.bf16 %v786_v47, %v784_v46 }
 0x1f7   : > { %v807_v51 = vpack.c.bf16 %v787_v49, %v785_v48  ;;  %v745_v52 = vpop.f32.mrb[24].mxu0 }
 0x1f8   : > { %v746_v53 = vadd.f32 %v745_v52, %v3301_v25  ;;  %v747_v54 = vpop.f32.mrb[25].mxu0 }
 0x1f9   : > { %v748_v55 = vadd.f32 %v747_v54, %v3304_v26  ;;  %v749_v56 = vpop.f32.mrb[26].mxu0  ;;  %1098 = vmatprep.mubr.bf16.mxu1 %v807_v51 }
 0x1fa   : > { %v750_v57 = vadd.f32 %v749_v56, %v3301_v25  ;;  %v751_v58 = vpop.f32.mrb[27].mxu0  ;;  %1099 = vmatmul.mubr.bf16.gmra.mrb[20].mxu1 %v806_v50  ;;  %v788_v60 = vmax.f32 %v746_v53, 0.0 }
 0x1fb   : > { %v752_v59 = vadd.f32 %v751_v58, %v3304_v26  ;;  %v789_v62 = vmax.f32 %v748_v55, 0.0 }
 0x1fc   : > { %v790_v61 = vmax.f32 %v750_v57, 0.0 }
 0x1fd   : > { %v791_v63 = vmax.f32 %v752_v59, 0.0 }
 0x1fe   : > { %v808_v1 = vpack.c.bf16 %v790_v61, %v788_v60 }
 0x1ff   : > { %v809_v2 = vpack.c.bf16 %v791_v63, %v789_v62  ;;  %v755_v3 = vpop.f32.mrb[28].mxu0  ;;  %v1161_v62 = vld [vmem:[%s3250_s27] sm:$0xff] }
 0x200   : > { %v756_v4 = vadd.f32 %v755_v3, %v3301_v25  ;;  %v757_v5 = vpop.f32.mrb[29].mxu0 }
 0x201   : > { %v758_v6 = vadd.f32 %v757_v5, %v3304_v26  ;;  %v759_v7 = vpop.f32.mrb[30].mxu0  ;;  %1108 = vmatprep.mubr.bf16.mxu1 %v809_v2  ;;  %v1162_v5 = vld [vmem:[%s3250_s27 + $0x8] sm:$0xff] }
 0x202   : > { %v760_v8 = vadd.f32 %v759_v7, %v3301_v25  ;;  %v761_v9 = vpop.f32.mrb[31].mxu0  ;;  %1109 = vmatmul.mubr.bf16.gmra.mrb[24].mxu1 %v808_v1  ;;  %v792_v11 = vmax.f32 %v756_v4, 0.0  ;;  %v2494_v25 = vld [vmem:[#allocation10 + $0x74] ss:$8 sps:$4 sm:$0xff]  }
 0x203   : > { %v762_v10 = vadd.f32 %v761_v9, %v3304_v26  ;;  %v793_v13 = vmax.f32 %v758_v6, 0.0  ;;  %1387 = vmatprep.subr.bf16.mxu0 %v2494_v25  ;;  %v2495_v26 = vld [vmem:[#allocation11 + $0x40] sm:$0xff]   ;;  %v1163_v25 = vld [vmem:[%s3250_s27 + $0x10] sm:$0xff] }
 0x204   : > { %v794_v12 = vmax.f32 %v760_v8, 0.0  ;;  %1388 = vmatpush1.bf16.msra.mxu0 %v2492_v21  ;;  %2277 = vmatprep.subr.bf16.mxu1 %v2495_v26 }
 0x205   : > { %v795_v14 = vmax.f32 %v762_v10, 0.0  ;;  %2213 = vmatprep.subr.bf16.mxu0 %v2495_v26  ;;  %2285 = vmatpush3.bf16.msra.mxu1 %v3338_v23 }
 0x206   : > { %v810_v15 = vpack.c.bf16 %v794_v12, %v792_v11  ;;  %2278 = vmatprep.subr.bf16.mxu1 %v3340_v27 }
 0x207   : > { %v811_v16 = vpack.c.bf16 %v795_v14, %v793_v13 }
 0x209   : > { %1118 = vmatprep.mubr.bf16.mxu1 %v811_v16  ;;  %2286 = vmatpush3.bf16.msra.mxu1 %v3344_v28 }
 0x20a   : > { %1119 = vmatmul.mubr.bf16.gmra.mrb[28].mxu1 %v810_v15  ;;  %2279 = vmatprep.subr.bf16.mxu1 %v3346_v29 }
 0x20d   : > { %2287 = vmatpush3.bf16.msra.mxu1 %v3350_v30 }
 0x20e   : > { %2280 = vmatprep.subr.bf16.mxu1 %v3352_v31 }
 0x211   : > { %2288 = vmatpush3.bf16.msra.mxu1 %v3356_v32 }
 0x212   : > { %2281 = vmatprep.subr.bf16.mxu1 %v3358_v33 }
 0x215   : > { %2289 = vmatpush3.bf16.msra.mxu1 %v3362_v34 }
 0x216   : > { %2282 = vmatprep.subr.bf16.mxu1 %v3364_v35 }
 0x2a5   : > { %v1050_v39 = vpop.f32.mrb[0].mxu1 }
 0x2a6   : > { %v1051_v40 = vadd.f32 %v1050_v39, %v3373_v37  ;;  %v1052_v41 = vpop.f32.mrb[1].mxu1 }
 0x2a7   : > { %v1053_v42 = vadd.f32 %v1052_v41, %v3376_v38  ;;  %v1054_v43 = vpop.f32.mrb[2].mxu1 }
 0x2a8   : > { %1129 = vst [vmem:[%s3380_s4] sm:$0xff] %v1051_v40  ;;  %v1055_v44 = vadd.f32 %v1054_v43, %v3373_v37  ;;  %v1056_v45 = vpop.f32.mrb[3].mxu1 }
 0x2a9   : > { %1130 = vst [vmem:[%s3380_s4 + $0x8] sm:$0xff] %v1053_v42  ;;  %v1177_v46 = vmul.f32 0.5, %v1053_v42  ;;  %v1057_v47 = vadd.f32 %v1056_v45, %v3376_v38  ;;  %v1164_v42 = vld [vmem:[%s3250_s27 + $0x18] sm:$0xff] }
 0x2aa   : > { %1131 = vst [vmem:[%s3380_s4 + $0x10] sm:$0xff] %v1055_v44 }
 0x2ab   : > { %v1193_v48 = vmul.f32 1.442695, %v1177_v46  ;;  %1132 = vst [vmem:[%s3380_s4 + $0x18] sm:$0xff] %v1057_v47  ;;  %v1178_v49 = vmul.f32 0.5, %v1057_v47 }
 0x2ad   : > { %2511 = vpow2.f32 %v1193_v48  ;;  %v1195_v50 = vmul.f32 1.442695, %v1178_v49  ;;  %v1060_v51 = vpop.f32.mrb[4].mxu1 }
 0x2ae   : > { %v3389_v52 = vadd.f32 %v1060_v51, %v3373_v37  ;;  %v1062_v53 = vpop.f32.mrb[5].mxu1 }
 0x2af   : > { %2513 = vpow2.f32 %v1195_v50  ;;  %v1063_v54 = vadd.f32 %v1062_v53, %v3376_v38  ;;  %v1064_v55 = vpop.f32.mrb[6].mxu1 }
 0x2b0   : > { %1133 = vst [vmem:[%s3380_s4 + $0x20] sm:$0xff] %v3389_v52  ;;  %v3395_v56 = vadd.f32 %v1064_v55, %v3373_v37  ;;  %v1066_v57 = vpop.f32.mrb[7].mxu1 }
 0x2b1   : > { %1134 = vst [vmem:[%s3380_s4 + $0x28] sm:$0xff] %v1063_v54  ;;  %v1179_v58 = vmul.f32 0.5, %v1063_v54  ;;  %v1067_v59 = vadd.f32 %v1066_v57, %v3376_v38 }
 0x2b2   : > { %1135 = vst [vmem:[%s3380_s4 + $0x30] sm:$0xff] %v3395_v56 }
 0x2b3   : > { %v1197_v60 = vmul.f32 1.442695, %v1179_v58  ;;  %1136 = vst [vmem:[%s3380_s4 + $0x38] sm:$0xff] %v1067_v59  ;;  %v1180_v61 = vmul.f32 0.5, %v1067_v59  ;;  %v1165_v58 = vld [vmem:[%s3250_s27 + $0x20] sm:$0xff] }
 0x2b5   : > { %2515 = vpow2.f32 %v1197_v60  ;;  %v1199_v63 = vmul.f32 1.442695, %v1180_v61  ;;  %v1070_v1 = vpop.f32.mrb[8].mxu1  ;;  %v1166_v61 = vld [vmem:[%s3250_s27 + $0x28] sm:$0xff] }
 0x2b6   : > { %v3404_v2 = vadd.f32 %v1070_v1, %v3373_v37  ;;  %v1072_v3 = vpop.f32.mrb[9].mxu1 }
 0x2b7   : > { %v2512_v4 = vpop.eup %2511  ;;  %2517 = vpow2.f32 %v1199_v63  ;;  %v1073_v6 = vadd.f32 %v1072_v3, %v3376_v38  ;;  %v1074_v7 = vpop.f32.mrb[10].mxu1 }
 0x2b8   : > { %v1225_v8 = vmul.f32 %v2512_v4, %v1161_v62  ;;  %1137 = vst [vmem:[%s3380_s4 + $0x40] sm:$0xff] %v3404_v2  ;;  %v3411_v9 = vadd.f32 %v1074_v7, %v3373_v37  ;;  %v1076_v10 = vpop.f32.mrb[11].mxu1 }
 0x2b9   : > { %v2514_v11 = vpop.eup %2513  ;;  %1138 = vst [vmem:[%s3380_s4 + $0x48] sm:$0xff] %v1073_v6  ;;  %v1181_v12 = vmul.f32 0.5, %v1073_v6  ;;  %v1077_v13 = vadd.f32 %v1076_v10, %v3376_v38 }
 0x2ba   : > { %v1226_v14 = vmul.f32 %v2514_v11, %v1162_v5  ;;  %1139 = vst [vmem:[%s3380_s4 + $0x50] sm:$0xff] %v3411_v9  ;;  %v1241_v15 = vadd.f32 %v1225_v8, %v1051_v40 }
 0x2bb   : > { %v1201_v16 = vmul.f32 1.442695, %v1181_v12  ;;  %1140 = vst [vmem:[%s3380_s4 + $0x58] sm:$0xff] %v1077_v13  ;;  %v1182_v17 = vmul.f32 0.5, %v1077_v13  ;;  %v1167_v12 = vld [vmem:[%s3250_s27 + $0x30] sm:$0xff] }
 0x2bc   : > { %v1242_v18 = vadd.f32 %v1226_v14, %v1055_v44 }
 0x2bd   : > { %2519 = vpow2.f32 %v1201_v16  ;;  %v1203_v19 = vmul.f32 1.442695, %v1182_v17  ;;  %v1080_v20 = vpop.f32.mrb[12].mxu1 }
 0x2be   : > { %v3420_v21 = vadd.f32 %v1080_v20, %v3373_v37  ;;  %v1082_v26 = vpop.f32.mrb[13].mxu1  ;;  %v1257_v36 = vpack.c.bf16 %v1242_v18, %v1241_v15  ;;  %v1168_v15 = vld [vmem:[%s3250_s27 + $0x38] sm:$0xff] }
 0x2bf   : > { %v2516_v39 = vpop.eup %2515  ;;  %2521 = vpow2.f32 %v1203_v19  ;;  %v1083_v40 = vadd.f32 %v1082_v26, %v3376_v38  ;;  %v1084_v41 = vpop.f32.mrb[14].mxu1 }
 0x2c0   : > { %1141 = vst [vmem:[%s3380_s4 + $0x60] sm:$0xff] %v3420_v21  ;;  %v3427_v43 = vadd.f32 %v1084_v41, %v3373_v37  ;;  %v1086_v44 = vpop.f32.mrb[15].mxu1  ;;  %1406 = vmatmul.mubr.bf16.vlgmr.msra.gmra.mrb[32].mxu0 %v1257_v36  ;;  %v1227_v45 = vmul.f32 %v2516_v39, %v1163_v25 }
 0x2c1   : > { %v2518_v46 = vpop.eup %2517  ;;  %1142 = vst [vmem:[%s3380_s4 + $0x68] sm:$0xff] %v1083_v40  ;;  %v1183_v47 = vmul.f32 0.5, %v1083_v40  ;;  %v1087_v48 = vadd.f32 %v1086_v44, %v3376_v38  ;;  %1415 = vmatprep.mubr.bf16.mxu0 %v2905_v0  ;;  %2214 = vmatpush3.bf16.msra.mxu0 %v3338_v23 }
 0x2c2   : > { %1143 = vst [vmem:[%s3380_s4 + $0x70] sm:$0xff] %v3427_v43  ;;  %v1228_v49 = vmul.f32 %v2518_v46, %v1164_v42  ;;  %v1243_v50 = vadd.f32 %v1227_v45, %v3389_v52  ;;  %2215 = vmatprep.subr.bf16.mxu0 %v3340_v27  ;;  %v1169_v42 = vld [vmem:[%s3250_s27 + $0x40] sm:$0xff] }
 0x2c3   : > { %v1205_v51 = vmul.f32 1.442695, %v1183_v47  ;;  %1144 = vst [vmem:[%s3380_s4 + $0x78] sm:$0xff] %v1087_v48  ;;  %v1184_v53 = vmul.f32 0.5, %v1087_v48  ;;  %v1170_v47 = vld [vmem:[%s3250_s27 + $0x48] sm:$0xff] }
 0x2c4   : > { %v1244_v54 = vadd.f32 %v1228_v49, %v3395_v56 }
 0x2c5   : > { %2523 = vpow2.f32 %v1205_v51  ;;  %v1207_v55 = vmul.f32 1.442695, %v1184_v53  ;;  %v1090_v57 = vpop.f32.mrb[16].mxu1  ;;  %2216 = vmatpush3.bf16.msra.mxu0 %v3344_v28 }
 0x2c6   : > { %v3442_v23 = vadd.f32 %v1090_v57, %v3373_v37  ;;  %v1092_v52 = vpop.f32.mrb[17].mxu1  ;;  %v1258_v59 = vpack.c.bf16 %v1244_v54, %v1243_v50  ;;  %2217 = vmatprep.subr.bf16.mxu0 %v3346_v29 }
 0x2c7   : > { %v2520_v27 = vpop.eup %2519  ;;  %2525 = vpow2.f32 %v1207_v55  ;;  %v1093_v60 = vadd.f32 %v1092_v52, %v3376_v38  ;;  %v1094_v56 = vpop.f32.mrb[18].mxu1 }
 0x2c8   : > { %1145 = vst [vmem:[%s3380_s4 + $0x80] sm:$0xff] %v3442_v23  ;;  %v3450_v28 = vadd.f32 %v1094_v56, %v3373_v37  ;;  %v1096_v62 = vpop.f32.mrb[19].mxu1  ;;  %1416 = vmatmul.mubr.bf16.gmra.mrb[36].mxu0 %v1258_v59  ;;  %v1229_v63 = vmul.f32 %v2520_v27, %v1165_v58 }
 0x2c9   : > { %v2522_v1 = vpop.eup %2521  ;;  %1146 = vst [vmem:[%s3380_s4 + $0x88] sm:$0xff] %v1093_v60  ;;  %v1185_v29 = vmul.f32 0.5, %v1093_v60  ;;  %v1097_v3 = vadd.f32 %v1096_v62, %v3376_v38  ;;  %1425 = vmatprep.mubr.bf16.mxu0 %v2905_v0  ;;  %2218 = vmatpush3.bf16.msra.mxu0 %v3350_v30  ;;  %v1171_v60 = vld [vmem:[%s3250_s27 + $0x50] sm:$0xff] }
 0x2ca   : > { %1147 = vst [vmem:[%s3380_s4 + $0x90] sm:$0xff] %v3450_v28  ;;  %v1230_v4 = vmul.f32 %v2522_v1, %v1166_v61  ;;  %v1245_v5 = vadd.f32 %v1229_v63, %v3404_v2  ;;  %2219 = vmatprep.subr.bf16.mxu0 %v3352_v31 }
 0x2cb   : > { %v1209_v6 = vmul.f32 1.442695, %v1185_v29  ;;  %1148 = vst [vmem:[%s3380_s4 + $0x98] sm:$0xff] %v1097_v3  ;;  %v1186_v7 = vmul.f32 0.5, %v1097_v3  ;;  %v1172_v29 = vld [vmem:[%s3250_s27 + $0x58] sm:$0xff] }
 0x2cc   : > { %v1246_v8 = vadd.f32 %v1230_v4, %v3411_v9 }
 0x2cd   : > { %2527 = vpow2.f32 %v1209_v6  ;;  %v1211_v10 = vmul.f32 1.442695, %v1186_v7  ;;  %v1100_v11 = vpop.f32.mrb[20].mxu1  ;;  %2220 = vmatpush3.bf16.msra.mxu0 %v3356_v32 }
 0x2ce   : > { %v3465_v30 = vadd.f32 %v1100_v11, %v3373_v37  ;;  %v1102_v2 = vpop.f32.mrb[21].mxu1  ;;  %v1259_v13 = vpack.c.bf16 %v1246_v8, %v1245_v5  ;;  %2221 = vmatprep.subr.bf16.mxu0 %v3358_v33 }
 0x2cf   : > { %v2524_v31 = vpop.eup %2523  ;;  %2529 = vpow2.f32 %v1211_v10  ;;  %v1103_v14 = vadd.f32 %v1102_v2, %v3376_v38  ;;  %v1104_v9 = vpop.f32.mrb[22].mxu1 }
 0x2d0   : > { %1149 = vst [vmem:[%s3380_s4 + $0xa0] sm:$0xff] %v3465_v30  ;;  %v3473_v32 = vadd.f32 %v1104_v9, %v3373_v37  ;;  %v1106_v16 = vpop.f32.mrb[23].mxu1  ;;  %1426 = vmatmul.mubr.bf16.gmra.mrb[40].mxu0 %v1259_v13  ;;  %v1231_v17 = vmul.f32 %v2524_v31, %v1167_v12  ;;  %v1173_v13 = vld [vmem:[%s3250_s27 + $0x60] sm:$0xff] }
 0x2d1   : > { %v2526_v18 = vpop.eup %2525  ;;  %1150 = vst [vmem:[%s3380_s4 + $0xa8] sm:$0xff] %v1103_v14  ;;  %v1187_v33 = vmul.f32 0.5, %v1103_v14  ;;  %v1107_v19 = vadd.f32 %v1106_v16, %v3376_v38  ;;  %1435 = vmatprep.mubr.bf16.mxu0 %v2905_v0  ;;  %2222 = vmatpush3.bf16.msra.mxu0 %v3362_v34 }
 0x2d2   : > { %1151 = vst [vmem:[%s3380_s4 + $0xb0] sm:$0xff] %v3473_v32  ;;  %v1232_v20 = vmul.f32 %v2526_v18, %v1168_v15  ;;  %v1247_v25 = vadd.f32 %v1231_v17, %v3420_v21  ;;  %2223 = vmatprep.subr.bf16.mxu0 %v3364_v35  ;;  %v1175_v18 = vld [vmem:[%s3250_s27 + $0x70] sm:$0xff] }
 0x2d3   : > { %v1213_v26 = vmul.f32 1.442695, %v1187_v33  ;;  %1152 = vst [vmem:[%s3380_s4 + $0xb8] sm:$0xff] %v1107_v19  ;;  %v1188_v36 = vmul.f32 0.5, %v1107_v19  ;;  %v1176_v19 = vld [vmem:[%s3250_s27 + $0x78] sm:$0xff] }
 0x2d4   : > { %v1248_v39 = vadd.f32 %v1232_v20, %v3427_v43 }
 0x2d5   : > { %2531 = vpow2.f32 %v1213_v26  ;;  %v1215_v40 = vmul.f32 1.442695, %v1188_v36  ;;  %v1110_v41 = vpop.f32.mrb[24].mxu1 }
 0x2d6   : > { %v3487_v34 = vadd.f32 %v1110_v41, %v3373_v37  ;;  %v1112_v44 = vpop.f32.mrb[25].mxu1  ;;  %v1260_v45 = vpack.c.bf16 %v1248_v39, %v1247_v25  ;;  %v2506_v41 = vld [vmem:[#allocation11 + $0x28] sm:$0xff]  }
 0x2d7   : > { %v2528_v21 = vpop.eup %2527  ;;  %2533 = vpow2.f32 %v1215_v40  ;;  %v1113_v35 = vadd.f32 %v1112_v44, %v3376_v38  ;;  %v1114_v46 = vpop.f32.mrb[26].mxu1  ;;  %2224 = vmatpush3.bf16.msra.mxu0 %v2506_v41  ;;  %2290 = vmatpush3.bf16.msra.mxu1 %v2506_v41  ;;  %v2509_v44 = vld [vmem:[#allocation11 + $0x78] sm:$0xff]  }
 0x2d8   : > { %1153 = vst [vmem:[%s3380_s4 + $0xc0] sm:$0xff] %v3487_v34  ;;  %v1115_v43 = vadd.f32 %v1114_v46, %v3373_v37  ;;  %v1116_v48 = vpop.f32.mrb[27].mxu1  ;;  %1436 = vmatmul.mubr.bf16.gmra.mrb[44].mxu0 %v1260_v45  ;;  %v1233_v49 = vmul.f32 %v2528_v21, %v1169_v42  ;;  %v2507_v42 = vld [vmem:[#allocation11 + $0x70] sm:$0xff]   ;;  %v2510_v45 = vld [vmem:[#allocation11 + $0x38] sm:$0xff]  }
 0x2d9   : > { %v2530_v50 = vpop.eup %2529  ;;  %1154 = vst [vmem:[%s3380_s4 + $0xc8] sm:$0xff] %v1113_v35  ;;  %v1189_v51 = vmul.f32 0.5, %v1113_v35  ;;  %v1117_v53 = vadd.f32 %v1116_v48, %v3376_v38  ;;  %1445 = vmatprep.mubr.bf16.mxu0 %v2905_v0  ;;  %2225 = vmatprep.subr.bf16.mxu0 %v2507_v42 }
 0x2da   : > { %1155 = vst [vmem:[%s3380_s4 + $0xd0] sm:$0xff] %v1115_v43  ;;  %v1234_v54 = vmul.f32 %v2530_v50, %v1170_v47  ;;  %v1249_v55 = vadd.f32 %v1233_v49, %v3442_v23  ;;  %2283 = vmatprep.subr.bf16.mxu1 %v2507_v42 }
 0x2db   : > { %v1217_v57 = vmul.f32 1.442695, %v1189_v51  ;;  %1156 = vst [vmem:[%s3380_s4 + $0xd8] sm:$0xff] %v1117_v53  ;;  %v1190_v58 = vmul.f32 0.5, %v1117_v53 }
 0x2dc   : > { %v1250_v52 = vadd.f32 %v1234_v54, %v3450_v28 }
 0x2dd   : > { %2535 = vpow2.f32 %v1217_v57  ;;  %v1219_v59 = vmul.f32 1.442695, %v1190_v58  ;;  %v1120_v27 = vpop.f32.mrb[28].mxu1 }
 0x2de   : > { %v1121_v56 = vadd.f32 %v1120_v27, %v3373_v37  ;;  %v1122_v61 = vpop.f32.mrb[29].mxu1  ;;  %v1261_v62 = vpack.c.bf16 %v1250_v52, %v1249_v55 }
 0x2df   : > { %v2532_v63 = vpop.eup %2531  ;;  %2537 = vpow2.f32 %v1219_v59  ;;  %v1123_v23 = vadd.f32 %v1122_v61, %v3376_v38  ;;  %v1124_v1 = vpop.f32.mrb[30].mxu1 }
 0x2e0   : > { %1157 = vst [vmem:[%s3380_s4 + $0xe0] sm:$0xff] %v1121_v56  ;;  %v1125_v28 = vadd.f32 %v1124_v1, %v3373_v37  ;;  %v1126_v3 = vpop.f32.mrb[31].mxu1  ;;  %1446 = vmatmul.mubr.bf16.gmra.mrb[48].mxu0 %v1261_v62  ;;  %v1235_v4 = vmul.f32 %v2532_v63, %v1171_v60 }
 0x2e1   : > { %v2534_v5 = vpop.eup %2533  ;;  %1158 = vst [vmem:[%s3380_s4 + $0xe8] sm:$0xff] %v1123_v23  ;;  %v1191_v6 = vmul.f32 0.5, %v1123_v23  ;;  %v1127_v7 = vadd.f32 %v1126_v3, %v3376_v38  ;;  %1455 = vmatprep.mubr.bf16.mxu0 %v2905_v0  ;;  %v1174_v38 = vld [vmem:[%s3250_s27 + $0x68] sm:$0xff]  ;;  %s2779_s27 = scalar_lea.vmem %s3569_s9, 4096 }
 0x2e2   : > { %1159 = vst [vmem:[%s3380_s4 + $0xf0] sm:$0xff] %v1125_v28  ;;  %v1236_v8 = vmul.f32 %v2534_v5, %v1172_v29  ;;  %v1251_v10 = vadd.f32 %v1235_v4, %v3465_v30  ;;  %p2780_p0 = scmp.ne.s32.totalorder %s3569_s9, %s2779_s27  ;;  %p2787_p5 = scmp.lt.s32.totalorder %s2785_s24, %s2779_s27 }
 0x2e3   : > { %v1221_v11 = vmul.f32 1.442695, %v1191_v6  ;;  %1160 = vst [vmem:[%s3380_s4 + $0xf8] sm:$0xff] %v1127_v7  ;;  %v1192_v12 = vmul.f32 0.5, %v1127_v7 }
 0x2e4   : > { %v1252_v37 = vadd.f32 %v1236_v8, %v3473_v32  ;;  %p2781_p4 = pnand %p2780_p0, %p3143_p3  ;;  %p2788_p9 = por %p2787_p5, %p2786_p10 }
 0x2e5   : > { %2539 = vpow2.f32 %v1221_v11  ;;  %v1223_v2 = vmul.f32 1.442695, %v1192_v12 }
 0x2e6   : > { %v1262_v31 = vpack.c.bf16 %v1252_v37, %v1251_v10  ;;  %p2782_p6 = pneg %p2781_p4 }
 0x2e7   : > { %v2536_v14 = vpop.eup %2535  ;;  %2541 = vpow2.f32 %v1223_v2 }
 0x2e8   : > { %1456 = vmatmul.mubr.bf16.gmra.mrb[52].mxu0 %v1262_v31  ;;  %v1237_v9 = vmul.f32 %v2536_v14, %v1173_v13  ;;  %p2789_p8 = pnand %p2788_p9, %p2782_p6 }
 0x2e9   : > { %v2538_v15 = vpop.eup %2537  ;;  %1465 = vmatprep.mubr.bf16.mxu0 %v2905_v0 }
 0x2ea   : > { %v1238_v30 = vmul.f32 %v2538_v15, %v1174_v38  ;;  %v1253_v16 = vadd.f32 %v1237_v9, %v3487_v34  ;;  %v2508_v34 = vld [vmem:[#allocation11 + $0x30] sm:$0xff]  }
 0x2eb   : > { %2226 = vmatpush3.bf16.msra.mxu0 %v2508_v34  ;;  %2291 = vmatpush3.bf16.msra.mxu1 %v2508_v34 }
 0x2ec   : > { %v1254_v17 = vadd.f32 %v1238_v30, %v1115_v43  ;;  %2227 = vmatprep.subr.bf16.mxu0 %v2509_v44  ;;  %2284 = vmatprep.subr.bf16.mxu1 %v2509_v44 }
 0x2ee   : > { %v1263_v33 = vpack.c.bf16 %v1254_v17, %v1253_v16 }
 0x2ef   : > { %v2540_v32 = vpop.eup %2539  ;;  %2228 = vmatpush3.bf16.msra.mxu0 %v2510_v45  ;;  %2292 = vmatpush3.bf16.msra.mxu1 %v2510_v45 }
 0x2f0   : > { %1466 = vmatmul.mubr.bf16.gmra.mrb[56].mxu0 %v1263_v33  ;;  %v1239_v20 = vmul.f32 %v2540_v32, %v1175_v18 }
 0x2f1   : > { %v2542_v25 = vpop.eup %2541  ;;  %1475 = vmatprep.mubr.bf16.mxu0 %v2905_v0  ;;  %v1281_v0 = vld [vmem:[%s3693_s7] sm:$0x3] }
 0x2f2   : > { %v1240_v26 = vmul.f32 %v2542_v25, %v1176_v19  ;;  %v1255_v36 = vadd.f32 %v1239_v20, %v1121_v56  ;;  %v3525_v21 = vrot.slane %v1281_v0, %v3293_v22  ;;  %v3528_v35 = vrot.slane %v1281_v0, %v3298_v24 }
 0x2f4   : > { %v1256_v39 = vadd.f32 %v1240_v26, %v1125_v28 }
 0x2f6   : > { %v1264_v40 = vpack.c.bf16 %v1256_v39, %v1255_v36 }
 0x2f8   : > { %1476 = vmatmul.mubr.bf16.gmra.mrb[60].mxu0 %v1264_v40 }
 0x393   : > { %v1407_v46 = vpop.f32.mrb[32].mxu0 }
 0x394   : > { %v1408_v47 = vadd.f32 %v1407_v46, %v3525_v21  ;;  %v1409_v43 = vpop.f32.mrb[33].mxu0 }
 0x395   : > { %v1410_v48 = vadd.f32 %v1409_v43, %v3528_v35  ;;  %v1411_v49 = vpop.f32.mrb[34].mxu0 }
 0x396   : > { %v1412_v50 = vadd.f32 %v1411_v49, %v3525_v21  ;;  %v1413_v51 = vpop.f32.mrb[35].mxu0  ;;  %v1486_v54 = vmax.f32 %v1408_v47, 0.0 }
 0x397   : > { %v1414_v53 = vadd.f32 %v1413_v51, %v3528_v35  ;;  %v1487_v57 = vmax.f32 %v1410_v48, 0.0 }
 0x398   : > { %v1488_v55 = vmax.f32 %v1412_v50, 0.0 }
 0x399   : > { %v1489_v22 = vmax.f32 %v1414_v53, 0.0 }
 0x39a   : > { %v1518_v58 = vpack.c.bf16 %v1488_v55, %v1486_v54 }
 0x39b   : > { %v1519_v52 = vpack.c.bf16 %v1489_v22, %v1487_v57  ;;  %v1417_v24 = vpop.f32.mrb[36].mxu0 }
 0x39c   : > { %v1418_v59 = vadd.f32 %v1417_v24, %v3525_v21  ;;  %v1419_v27 = vpop.f32.mrb[37].mxu0 }
 0x39d   : > { %v1420_v60 = vadd.f32 %v1419_v27, %v3528_v35  ;;  %v1421_v56 = vpop.f32.mrb[38].mxu0  ;;  %1701 = vmatprep.mubr.bf16.mxu0 %v1519_v52 }
 0x39e   : > { %v1422_v61 = vadd.f32 %v1421_v56, %v3525_v21  ;;  %v1423_v62 = vpop.f32.mrb[39].mxu0  ;;  %1702 = vmatmul.mubr.bf16.vlgmr.msra.gmra.mrb[64].mxu0 %v1518_v58  ;;  %v1490_v23 = vmax.f32 %v1418_v59, 0.0 }
 0x39f   : > { %v1424_v63 = vadd.f32 %v1423_v62, %v3528_v35  ;;  %v1491_v29 = vmax.f32 %v1420_v60, 0.0 }
 0x3a0   : > { %v1492_v1 = vmax.f32 %v1422_v61, 0.0 }
 0x3a1   : > { %v1493_v28 = vmax.f32 %v1424_v63, 0.0 }
 0x3a2   : > { %v1520_v3 = vpack.c.bf16 %v1492_v1, %v1490_v23 }
 0x3a3   : > { %v1521_v4 = vpack.c.bf16 %v1493_v28, %v1491_v29  ;;  %v1427_v5 = vpop.f32.mrb[40].mxu0 }
 0x3a4   : > { %v1428_v6 = vadd.f32 %v1427_v5, %v3525_v21  ;;  %v1429_v7 = vpop.f32.mrb[41].mxu0 }
 0x3a5   : > { %v1430_v8 = vadd.f32 %v1429_v7, %v3528_v35  ;;  %v1431_v10 = vpop.f32.mrb[42].mxu0  ;;  %1709 = vmatprep.mubr.bf16.mxu0 %v1521_v4 }
 0x3a6   : > { %v1432_v11 = vadd.f32 %v1431_v10, %v3525_v21  ;;  %v1433_v12 = vpop.f32.mrb[43].mxu0  ;;  %1710 = vmatmul.mubr.bf16.gmra.mrb[68].mxu0 %v1520_v3  ;;  %v1494_v2 = vmax.f32 %v1428_v6, 0.0 }
 0x3a7   : > { %v1434_v37 = vadd.f32 %v1433_v12, %v3528_v35  ;;  %v1495_v31 = vmax.f32 %v1430_v8, 0.0 }
 0x3a8   : > { %v1496_v13 = vmax.f32 %v1432_v11, 0.0 }
 0x3a9   : > { %v1497_v14 = vmax.f32 %v1434_v37, 0.0 }
 0x3aa   : > { %v1522_v38 = vpack.c.bf16 %v1496_v13, %v1494_v2 }
 0x3ab   : > { %v1523_v9 = vpack.c.bf16 %v1497_v14, %v1495_v31  ;;  %v1437_v15 = vpop.f32.mrb[44].mxu0 }
 0x3ac   : > { %v1438_v30 = vadd.f32 %v1437_v15, %v3525_v21  ;;  %v1439_v16 = vpop.f32.mrb[45].mxu0 }
 0x3ad   : > { %v1440_v17 = vadd.f32 %v1439_v16, %v3528_v35  ;;  %v1441_v18 = vpop.f32.mrb[46].mxu0  ;;  %1717 = vmatprep.mubr.bf16.mxu1 %v1523_v9 }
 0x3ae   : > { %v1442_v33 = vadd.f32 %v1441_v18, %v3525_v21  ;;  %v1443_v32 = vpop.f32.mrb[47].mxu0  ;;  %1718 = vmatmul.mubr.bf16.vlgmr.msra.gmra.mrb[32].mxu1 %v1522_v38  ;;  %v1498_v20 = vmax.f32 %v1438_v30, 0.0 }
 0x3af   : > { %v1444_v19 = vadd.f32 %v1443_v32, %v3528_v35  ;;  %v1499_v26 = vmax.f32 %v1440_v17, 0.0 }
 0x3b0   : > { %v1500_v25 = vmax.f32 %v1442_v33, 0.0 }
 0x3b1   : > { %v1501_v36 = vmax.f32 %v1444_v19, 0.0 }
 0x3b2   : > { %v1524_v39 = vpack.c.bf16 %v1500_v25, %v1498_v20 }
 0x3b3   : > { %v1525_v40 = vpack.c.bf16 %v1501_v36, %v1499_v26  ;;  %v1447_v41 = vpop.f32.mrb[48].mxu0 }
 0x3b4   : > { %v1448_v42 = vadd.f32 %v1447_v41, %v3525_v21  ;;  %v1449_v34 = vpop.f32.mrb[49].mxu0 }
 0x3b5   : > { %v1450_v44 = vadd.f32 %v1449_v34, %v3528_v35  ;;  %v1451_v45 = vpop.f32.mrb[50].mxu0  ;;  %1725 = vmatprep.mubr.bf16.mxu1 %v1525_v40 }
 0x3b6   : > { %v1452_v0 = vadd.f32 %v1451_v45, %v3525_v21  ;;  %v1453_v46 = vpop.f32.mrb[51].mxu0  ;;  %1726 = vmatmul.mubr.bf16.gmra.mrb[36].mxu1 %v1524_v39  ;;  %v1502_v43 = vmax.f32 %v1448_v42, 0.0 }
 0x3b7   : > { %v1454_v47 = vadd.f32 %v1453_v46, %v3528_v35  ;;  %v1503_v49 = vmax.f32 %v1450_v44, 0.0 }
 0x3b8   : > { %v1504_v48 = vmax.f32 %v1452_v0, 0.0 }
 0x3b9   : > { %v1505_v50 = vmax.f32 %v1454_v47, 0.0 }
 0x3ba   : > { %v1526_v51 = vpack.c.bf16 %v1504_v48, %v1502_v43 }
 0x3bb   : > { %v1527_v53 = vpack.c.bf16 %v1505_v50, %v1503_v49  ;;  %v1457_v54 = vpop.f32.mrb[52].mxu0 }
 0x3bc   : > { %v1458_v55 = vadd.f32 %v1457_v54, %v3525_v21  ;;  %v1459_v57 = vpop.f32.mrb[53].mxu0 }
 0x3bd   : > { %v1460_v22 = vadd.f32 %v1459_v57, %v3528_v35  ;;  %v1461_v58 = vpop.f32.mrb[54].mxu0  ;;  %1733 = vmatprep.mubr.bf16.mxu1 %v1527_v53 }
 0x3be   : > { %v1462_v52 = vadd.f32 %v1461_v58, %v3525_v21  ;;  %v1463_v24 = vpop.f32.mrb[55].mxu0  ;;  %1734 = vmatmul.mubr.bf16.gmra.mrb[40].mxu1 %v1526_v51  ;;  %v1506_v27 = vmax.f32 %v1458_v55, 0.0 }
 0x3bf   : > { %v1464_v59 = vadd.f32 %v1463_v24, %v3528_v35  ;;  %v1507_v56 = vmax.f32 %v1460_v22, 0.0 }
 0x3c0   : > { %v1508_v60 = vmax.f32 %v1462_v52, 0.0 }
 0x3c1   : > { %v1509_v61 = vmax.f32 %v1464_v59, 0.0 }
 0x3c2   : > { %v1528_v62 = vpack.c.bf16 %v1508_v60, %v1506_v27 }
 0x3c3   : > { %v1529_v63 = vpack.c.bf16 %v1509_v61, %v1507_v56  ;;  %v1467_v23 = vpop.f32.mrb[56].mxu0 }
 0x3c4   : > { %v1468_v1 = vadd.f32 %v1467_v23, %v3525_v21  ;;  %v1469_v29 = vpop.f32.mrb[57].mxu0 }
 0x3c5   : > { %v1470_v28 = vadd.f32 %v1469_v29, %v3528_v35  ;;  %v1471_v3 = vpop.f32.mrb[58].mxu0  ;;  %1741 = vmatprep.mubr.bf16.mxu1 %v1529_v63 }
 0x3c6   : > { %v1472_v4 = vadd.f32 %v1471_v3, %v3525_v21  ;;  %v1473_v5 = vpop.f32.mrb[59].mxu0  ;;  %1742 = vmatmul.mubr.bf16.gmra.mrb[44].mxu1 %v1528_v62  ;;  %v1510_v7 = vmax.f32 %v1468_v1, 0.0 }
 0x3c7   : > { %v1474_v6 = vadd.f32 %v1473_v5, %v3528_v35  ;;  %v1511_v10 = vmax.f32 %v1470_v28, 0.0 }
 0x3c8   : > { %v1512_v8 = vmax.f32 %v1472_v4, 0.0 }
 0x3c9   : > { %v1513_v11 = vmax.f32 %v1474_v6, 0.0 }
 0x3ca   : > { %v1530_v12 = vpack.c.bf16 %v1512_v8, %v1510_v7 }
 0x3cb   : > { %v1531_v37 = vpack.c.bf16 %v1513_v11, %v1511_v10  ;;  %v1477_v2 = vpop.f32.mrb[60].mxu0 }
 0x3cc   : > { %v1478_v13 = vadd.f32 %v1477_v2, %v3525_v21  ;;  %v1479_v31 = vpop.f32.mrb[61].mxu0 }
 0x3cd   : > { %v1480_v14 = vadd.f32 %v1479_v31, %v3528_v35  ;;  %v1481_v38 = vpop.f32.mrb[62].mxu0  ;;  %1749 = vmatprep.mubr.bf16.mxu1 %v1531_v37 }
 0x3ce   : > { %v1482_v9 = vadd.f32 %v1481_v38, %v3525_v21  ;;  %v1483_v15 = vpop.f32.mrb[63].mxu0  ;;  %1750 = vmatmul.mubr.bf16.gmra.mrb[48].mxu1 %v1530_v12  ;;  %v1514_v16 = vmax.f32 %v1478_v13, 0.0 }
 0x3cf   : > { %v1484_v30 = vadd.f32 %v1483_v15, %v3528_v35  ;;  %v1515_v18 = vmax.f32 %v1480_v14, 0.0 }
 0x3d0   : > { %v1516_v17 = vmax.f32 %v1482_v9, 0.0 }
 0x3d1   : > { %v1517_v33 = vmax.f32 %v1484_v30, 0.0 }
 0x3d2   : > { %v1532_v32 = vpack.c.bf16 %v1516_v17, %v1514_v16 }
 0x3d3   : > { %v1533_v19 = vpack.c.bf16 %v1517_v33, %v1515_v18 }
 0x3d5   : > { %1757 = vmatprep.mubr.bf16.mxu1 %v1533_v19 }
 0x3d6   : > { %1758 = vmatmul.mubr.bf16.gmra.mrb[52].mxu1 %v1532_v32 }
 0x3d7   : > { %2792 = shalt.err (!%p2789_p8)
}
 0x3d8   : > { %s2793_s26 = scalar_lea.hbm %s3567_s25, 4096  ;;  %s2797_s14 = scalar_lea.hbm %s3738_s28, 8192 }
 0x3d9   : > { %p2794_p11 = scmp.ne.s32.totalorder %s3567_s25, %s2793_s26  ;;  %p2798_p1 = scmp.lt.u32.totalorder %s3567_s25, %s3738_s28 }
 0x3da   : > { %p2799_p2 = scmp.lt.u32.totalorder %s2797_s14, %s2793_s26  ;;  %p2801_p0 = scmp.lt.u32.totalorder %s2793_s26, %s3567_s25 }
 0x3db   : > { %p2795_p7 = pnand %p2794_p11, %p3143_p3 }
 0x3dc   : > { %p2800_p13 = por %p2799_p2, %p2798_p1 }
 0x3dd   : > { %p2796_p12 = pneg %p2795_p7 }
 0x3de   : > { %p2802_p4 = por %p2801_p0, %p2800_p13 }
 0x3e0   : > { %p2803_p6 = pnand %p2802_p4, %p2796_p12 }
 0x3e2   : > { %2806 = shalt.err (!%p2803_p6)
}
 0x3e3   : > { %s2907_s0 = smov 256   ;;  %s2908_s10 = smov 16  }
 0x3e4   : > { %2314 = dma.vmem_to_hbm [thread:$0]  (%p3143_p3), %s3569_s9, 4096, %s3567_s25, %s1884_s15, %s2907_s0, %s2907_s0, %s2908_s10  }
 0x3e5   : > { %s3739_s13 = sld [smem:[#allocation28_spill]]  ;;  %s3609_s9 = scalar_lea.vmem [#allocation13], %s3238_s11 }
 0x3e6   : > { %s2210_s11 = sshll.u32 %s2993_s21, 11  ;;  %s1897_s25 = sshll.u32 %s3609_s9, 4  ;;  %s3640_s25 = int_to_ptr.vmem [resolvable:$true] %s1897_s25 }
 0x3e7   : > { %s3740_s26 = sld [smem:[#allocation29_spill]]  ;;  %s1879_s4 = scalar_lea.sflag [#allocation4], %s3235_s22 }
 0x3e8   : > { %s2807_s14 = scalar_lea.vmem %s3640_s25, 2048  ;;  %s2909_s21 = smov [#allocation13]  }
 0x3e9   : > { %p2808_p10 = scmp.ne.s32.totalorder %s3640_s25, %s2807_s14  ;;  %s2811_s16 = sshll.u32 %s2909_s21, 4  ;;  %s2812_s16 = int_to_ptr.vmem [resolvable:$false] %s2811_s16 }
 0x3ea   : > { %s2813_s30 = scalar_lea.vmem %s2812_s16, 4096  ;;  %p2814_p8 = scmp.lt.s32.totalorder %s3640_s25, %s2812_s16 }
 0x3eb   : > { %v3598_v35 = vld [vmem:[%s3739_s13] ss:$0 sm:$0xff]  ;;  %p2809_p5 = pnand %p2808_p10, %p3143_p3  ;;  %p2815_p11 = scmp.lt.s32.totalorder %s2813_s30, %s2807_s14 }
 0x3ed   : > { %s3638_s2 = scalar_lea.hbm %s3740_s26, %s2210_s11  ;;  %p2810_p9 = pneg %p2809_p5 }
 0x3ee   : > { %p2816_p7 = por %p2815_p11, %p2814_p8 }
 0x3f0   : > { %p2817_p12 = pnand %p2816_p7, %p2810_p9 }
 0x471   : > { %v2229_v21 = vpop.f32.mrb[64].mxu0 }
 0x472   : > { %v2230_v20 = vpop.f32.mrb[65].mxu0 }
 0x473   : > { %v2231_v25 = vadd.f32 %v2230_v20, %v2229_v21  ;;  %v2232_v26 = vpop.f32.mrb[66].mxu0 }
 0x474   : > { %v2233_v36 = vpop.f32.mrb[67].mxu0 }
 0x475   : > { %v1704_v39 = vadd.f32 %v2231_v25, %v3598_v35  ;;  %v2234_v40 = vadd.f32 %v2233_v36, %v2232_v26 }
 0x477   : > { %v2183_v41 = vmul.f32 -1.442695, %v1704_v39  ;;  %v1707_v42 = vadd.f32 %v2234_v40, %v3598_v35 }
 0x479   : > { %2543 = vpow2.f32 %v2183_v41  ;;  %v2184_v34 = vmul.f32 -1.442695, %v1707_v42  ;;  %v2235_v44 = vpop.f32.mrb[68].mxu0 }
 0x47a   : > { %v2236_v45 = vpop.f32.mrb[69].mxu0 }
 0x47b   : > { %2545 = vpow2.f32 %v2184_v34  ;;  %v2237_v0 = vadd.f32 %v2236_v45, %v2235_v44  ;;  %v2238_v46 = vpop.f32.mrb[70].mxu0 }
 0x47c   : > { %v2239_v47 = vpop.f32.mrb[71].mxu0 }
 0x47d   : > { %v1712_v43 = vadd.f32 %v2237_v0, %v3598_v35  ;;  %v2240_v48 = vadd.f32 %v2239_v47, %v2238_v46 }
 0x47f   : > { %v2185_v49 = vmul.f32 -1.442695, %v1712_v43  ;;  %v1715_v50 = vadd.f32 %v2240_v48, %v3598_v35 }
 0x481   : > { %2547 = vpow2.f32 %v2185_v49  ;;  %v2186_v51 = vmul.f32 -1.442695, %v1715_v50  ;;  %v2241_v53 = vpop.f32.mrb[32].mxu1 }
 0x482   : > { %v2242_v54 = vpop.f32.mrb[33].mxu1 }
 0x483   : > { %v2544_v55 = vpop.eup %2543  ;;  %2549 = vpow2.f32 %v2186_v51  ;;  %v2243_v57 = vadd.f32 %v2242_v54, %v2241_v53  ;;  %v2244_v22 = vpop.f32.mrb[34].mxu1 }
 0x484   : > { %v1814_v58 = vadd.f32 1.0, %v2544_v55  ;;  %v2245_v52 = vpop.f32.mrb[35].mxu1 }
 0x485   : > { %v2546_v24 = vpop.eup %2545  ;;  %v1720_v59 = vadd.f32 %v2243_v57, %v3598_v35  ;;  %v2246_v27 = vadd.f32 %v2245_v52, %v2244_v22 }
 0x486   : > { %2551 = vrcp.f32 %v1814_v58  ;;  %v1815_v60 = vadd.f32 1.0, %v2546_v24 }
 0x487   : > { %v2187_v56 = vmul.f32 -1.442695, %v1720_v59  ;;  %v1723_v61 = vadd.f32 %v2246_v27, %v3598_v35 }
 0x488   : > { %2553 = vrcp.f32 %v1815_v60 }
 0x489   : > { %2555 = vpow2.f32 %v2187_v56  ;;  %v2188_v62 = vmul.f32 -1.442695, %v1723_v61  ;;  %v2247_v63 = vpop.f32.mrb[36].mxu1 }
 0x48a   : > { %v2248_v23 = vpop.f32.mrb[37].mxu1 }
 0x48b   : > { %v2548_v1 = vpop.eup %2547  ;;  %2557 = vpow2.f32 %v2188_v62  ;;  %v2249_v29 = vadd.f32 %v2248_v23, %v2247_v63  ;;  %v2250_v28 = vpop.f32.mrb[38].mxu1 }
 0x48c   : > { %v1816_v3 = vadd.f32 1.0, %v2548_v1  ;;  %v2251_v4 = vpop.f32.mrb[39].mxu1 }
 0x48d   : > { %v2550_v5 = vpop.eup %2549  ;;  %v1728_v6 = vadd.f32 %v2249_v29, %v3598_v35  ;;  %v2252_v7 = vadd.f32 %v2251_v4, %v2250_v28 }
 0x48e   : > { %2559 = vrcp.f32 %v1816_v3  ;;  %v1817_v8 = vadd.f32 1.0, %v2550_v5 }
 0x48f   : > { %v2189_v10 = vmul.f32 -1.442695, %v1728_v6  ;;  %v1731_v11 = vadd.f32 %v2252_v7, %v3598_v35 }
 0x490   : > { %v2552_v12 = vpop.eup %2551  ;;  %2561 = vrcp.f32 %v1817_v8 }
 0x491   : > { %1862 = vst [vmem:[%s3609_s9] sm:$0xff] %v2552_v12  ;;  %2563 = vpow2.f32 %v2189_v10  ;;  %v2190_v37 = vmul.f32 -1.442695, %v1731_v11  ;;  %v2253_v2 = vpop.f32.mrb[40].mxu1 }
 0x492   : > { %v2554_v13 = vpop.eup %2553  ;;  %v2254_v31 = vpop.f32.mrb[41].mxu1 }
 0x493   : > { %v2556_v14 = vpop.eup %2555  ;;  %1863 = vst [vmem:[%s3609_s9 + $0x8] sm:$0xff] %v2554_v13  ;;  %2565 = vpow2.f32 %v2190_v37  ;;  %v2255_v38 = vadd.f32 %v2254_v31, %v2253_v2  ;;  %v2256_v9 = vpop.f32.mrb[42].mxu1 }
 0x494   : > { %v1818_v15 = vadd.f32 1.0, %v2556_v14  ;;  %v2257_v30 = vpop.f32.mrb[43].mxu1 }
 0x495   : > { %v2558_v16 = vpop.eup %2557  ;;  %v1736_v17 = vadd.f32 %v2255_v38, %v3598_v35  ;;  %v2258_v18 = vadd.f32 %v2257_v30, %v2256_v9 }
 0x496   : > { %2567 = vrcp.f32 %v1818_v15  ;;  %v1819_v33 = vadd.f32 1.0, %v2558_v16 }
 0x497   : > { %v2191_v32 = vmul.f32 -1.442695, %v1736_v17  ;;  %v1739_v19 = vadd.f32 %v2258_v18, %v3598_v35 }
 0x498   : > { %v2560_v21 = vpop.eup %2559  ;;  %2569 = vrcp.f32 %v1819_v33 }
 0x499   : > { %1864 = vst [vmem:[%s3609_s9 + $0x10] sm:$0xff] %v2560_v21  ;;  %2571 = vpow2.f32 %v2191_v32  ;;  %v2192_v20 = vmul.f32 -1.442695, %v1739_v19  ;;  %v2259_v25 = vpop.f32.mrb[44].mxu1 }
 0x49a   : > { %v2562_v26 = vpop.eup %2561  ;;  %v2260_v36 = vpop.f32.mrb[45].mxu1 }
 0x49b   : > { %v2564_v39 = vpop.eup %2563  ;;  %1865 = vst [vmem:[%s3609_s9 + $0x18] sm:$0xff] %v2562_v26  ;;  %2573 = vpow2.f32 %v2192_v20  ;;  %v2261_v40 = vadd.f32 %v2260_v36, %v2259_v25  ;;  %v2262_v41 = vpop.f32.mrb[46].mxu1 }
 0x49c   : > { %v1820_v42 = vadd.f32 1.0, %v2564_v39  ;;  %v2263_v34 = vpop.f32.mrb[47].mxu1 }
 0x49d   : > { %v2566_v44 = vpop.eup %2565  ;;  %v1744_v45 = vadd.f32 %v2261_v40, %v3598_v35  ;;  %v2264_v0 = vadd.f32 %v2263_v34, %v2262_v41 }
 0x49e   : > { %2575 = vrcp.f32 %v1820_v42  ;;  %v1821_v46 = vadd.f32 1.0, %v2566_v44 }
 0x49f   : > { %v2193_v47 = vmul.f32 -1.442695, %v1744_v45  ;;  %v1747_v43 = vadd.f32 %v2264_v0, %v3598_v35 }
 0x4a0   : > { %v2568_v48 = vpop.eup %2567  ;;  %2577 = vrcp.f32 %v1821_v46 }
 0x4a1   : > { %1866 = vst [vmem:[%s3609_s9 + $0x20] sm:$0xff] %v2568_v48  ;;  %2579 = vpow2.f32 %v2193_v47  ;;  %v2194_v49 = vmul.f32 -1.442695, %v1747_v43  ;;  %v2265_v50 = vpop.f32.mrb[48].mxu1 }
 0x4a2   : > { %v2570_v51 = vpop.eup %2569  ;;  %v2266_v53 = vpop.f32.mrb[49].mxu1 }
 0x4a3   : > { %v2572_v54 = vpop.eup %2571  ;;  %1867 = vst [vmem:[%s3609_s9 + $0x28] sm:$0xff] %v2570_v51  ;;  %2581 = vpow2.f32 %v2194_v49  ;;  %v2267_v55 = vadd.f32 %v2266_v53, %v2265_v50  ;;  %v2268_v57 = vpop.f32.mrb[50].mxu1 }
 0x4a4   : > { %v1822_v22 = vadd.f32 1.0, %v2572_v54  ;;  %v2269_v58 = vpop.f32.mrb[51].mxu1 }
 0x4a5   : > { %v2574_v52 = vpop.eup %2573  ;;  %v1752_v24 = vadd.f32 %v2267_v55, %v3598_v35  ;;  %v2270_v59 = vadd.f32 %v2269_v58, %v2268_v57 }
 0x4a6   : > { %2583 = vrcp.f32 %v1822_v22  ;;  %v1823_v27 = vadd.f32 1.0, %v2574_v52 }
 0x4a7   : > { %v2195_v60 = vmul.f32 -1.442695, %v1752_v24  ;;  %v1755_v56 = vadd.f32 %v2270_v59, %v3598_v35 }
 0x4a8   : > { %v2576_v61 = vpop.eup %2575  ;;  %2585 = vrcp.f32 %v1823_v27 }
 0x4a9   : > { %1868 = vst [vmem:[%s3609_s9 + $0x30] sm:$0xff] %v2576_v61  ;;  %2587 = vpow2.f32 %v2195_v60  ;;  %v2196_v62 = vmul.f32 -1.442695, %v1755_v56  ;;  %v2271_v63 = vpop.f32.mrb[52].mxu1 }
 0x4aa   : > { %v2578_v23 = vpop.eup %2577  ;;  %v2272_v1 = vpop.f32.mrb[53].mxu1 }
 0x4ab   : > { %v2580_v29 = vpop.eup %2579  ;;  %1869 = vst [vmem:[%s3609_s9 + $0x38] sm:$0xff] %v2578_v23  ;;  %2589 = vpow2.f32 %v2196_v62  ;;  %v2273_v28 = vadd.f32 %v2272_v1, %v2271_v63  ;;  %v2274_v3 = vpop.f32.mrb[54].mxu1 }
 0x4ac   : > { %v1824_v4 = vadd.f32 1.0, %v2580_v29  ;;  %v2275_v5 = vpop.f32.mrb[55].mxu1 }
 0x4ad   : > { %v2582_v6 = vpop.eup %2581  ;;  %v1760_v7 = vadd.f32 %v2273_v28, %v3598_v35  ;;  %v2276_v8 = vadd.f32 %v2275_v5, %v2274_v3 }
 0x4ae   : > { %2591 = vrcp.f32 %v1824_v4  ;;  %v1825_v10 = vadd.f32 1.0, %v2582_v6 }
 0x4af   : > { %v2197_v11 = vmul.f32 -1.442695, %v1760_v7  ;;  %v1763_v12 = vadd.f32 %v2276_v8, %v3598_v35 }
 0x4b0   : > { %v2584_v37 = vpop.eup %2583  ;;  %2593 = vrcp.f32 %v1825_v10 }
 0x4b1   : > { %1870 = vst [vmem:[%s3609_s9 + $0x40] sm:$0xff] %v2584_v37  ;;  %2595 = vpow2.f32 %v2197_v11  ;;  %v2198_v2 = vmul.f32 -1.442695, %v1763_v12 }
 0x4b2   : > { %v2586_v13 = vpop.eup %2585 }
 0x4b3   : > { %v2588_v31 = vpop.eup %2587  ;;  %1871 = vst [vmem:[%s3609_s9 + $0x48] sm:$0xff] %v2586_v13  ;;  %2597 = vpow2.f32 %v2198_v2 }
 0x4b4   : > { %v1826_v14 = vadd.f32 1.0, %v2588_v31 }
 0x4b5   : > { %v2590_v38 = vpop.eup %2589 }
 0x4b6   : > { %2599 = vrcp.f32 %v1826_v14  ;;  %v1827_v9 = vadd.f32 1.0, %v2590_v38 }
 0x4b8   : > { %v2592_v15 = vpop.eup %2591  ;;  %2601 = vrcp.f32 %v1827_v9 }
 0x4b9   : > { %1872 = vst [vmem:[%s3609_s9 + $0x50] sm:$0xff] %v2592_v15 }
 0x4ba   : > { %v2594_v35 = vpop.eup %2593 }
 0x4bb   : > { %v2596_v30 = vpop.eup %2595  ;;  %1873 = vst [vmem:[%s3609_s9 + $0x58] sm:$0xff] %v2594_v35 }
 0x4bc   : > { %v1828_v16 = vadd.f32 1.0, %v2596_v30 }
 0x4bd   : > { %v2598_v17 = vpop.eup %2597 }
 0x4be   : > { %2603 = vrcp.f32 %v1828_v16  ;;  %v1829_v18 = vadd.f32 1.0, %v2598_v17 }
 0x4c0   : > { %v2600_v33 = vpop.eup %2599  ;;  %2605 = vrcp.f32 %v1829_v18 }
 0x4c1   : > { %1874 = vst [vmem:[%s3609_s9 + $0x60] sm:$0xff] %v2600_v33 }
 0x4c2   : > { %v2602_v32 = vpop.eup %2601 }
 0x4c3   : > { %1875 = vst [vmem:[%s3609_s9 + $0x68] sm:$0xff] %v2602_v32 }
 0x4c8   : > { %v2604_v19 = vpop.eup %2603 }
 0x4c9   : > { %1876 = vst [vmem:[%s3609_s9 + $0x70] sm:$0xff] %v2604_v19 }
 0x4ca   : > { %v2606_v21 = vpop.eup %2605 }
 0x4cb   : > { %1877 = vst [vmem:[%s3609_s9 + $0x78] sm:$0xff] %v2606_v21 }
 0x4cc   : > { %2820 = shalt.err (!%p2817_p12)
}
 0x4cd   : > { %s2821_s0 = scalar_lea.hbm %s3638_s2, 2048  ;;  %s2825_s23 = scalar_lea.hbm %s3740_s26, 4096 }
 0x4ce   : > { %p2822_p1 = scmp.ne.s32.totalorder %s3638_s2, %s2821_s0  ;;  %p2826_p0 = scmp.lt.u32.totalorder %s3638_s2, %s3740_s26 }
 0x4cf   : > { %p2827_p4 = scmp.lt.u32.totalorder %s2825_s23, %s2821_s0  ;;  %p2829_p10 = scmp.lt.u32.totalorder %s2821_s0, %s3638_s2 }
 0x4d0   : > { %p2823_p2 = pnand %p2822_p1, %p3143_p3 }
 0x4d1   : > { %p2828_p6 = por %p2827_p4, %p2826_p0 }
 0x4d2   : > { %p2824_p13 = pneg %p2823_p2 }
 0x4d3   : > { %p2830_p5 = por %p2829_p10, %p2828_p6 }
 0x4d5   : > { %p2831_p9 = pnand %p2830_p5, %p2824_p13 }
 0x4d7   : > { %2834 = shalt.err (!%p2831_p9)
}
 0x4d8   : > { %s2910_s11 = smov 128   ;;  %s2911_s15 = smov 8  }
 0x4d9   : > { %2313 = dma.vmem_to_hbm [thread:$0]  (%p3143_p3), %s3640_s25, 2048, %s3638_s2, %s1879_s4, %s2910_s11, %s2910_s11, %s2911_s15  }
 0x4da PF: > { %s3741_s24 = sld [smem:[#allocation23_spill]]  ;;  %s3742_s14 = sld [smem:[#allocation24_spill]] }
 0x4db   : > { %p3744_p11 = scmp.ge.s32.totalorder %s2893_s20, 2 }
 0x4e0   : > { %s1929_s21 = sand.u32 1, %s3741_s24   ;;  %p3743_p8 = scmp.ne.s32.totalorder %s3742_s14, 0 }
 0x4e1   : > { %s1930_s16 = scalar_lea.sflag [#allocation4], %s1929_s21 }
 0x4e2   : > { %p2338_p7 = pnand %p3744_p11, %p3743_p8 }
 0x4e4   : > { %2872 = dma.done.wait (!%p2338_p7), %s1930_s16, 2048  }
 0x4e5   : > { %2874 = vsyncadd (!%p2338_p7), %s1930_s16, 4294965248  ;;  %s1939_s30 = scalar_lea.sflag [#allocation15], %s1929_s21 }
 0x4e6   : > { %2876 = dma.done.wait (!%p2338_p7), %s1939_s30, 4096  }
 0x4e7   : > { %2878 = vsyncadd (!%p2338_p7), %s1939_s30, 4294963200  ;;  %s3745_s12 = smov %s3130_s17  ;;  %p33_p3 = scmp.ge.s32.totalorder %s3130_s17, 4  }
 0x4e8   : > { %s3746_s17 = smov %s2885_s18  ;;  %s3747_s18 = smov %s2889_s19 }
 0x4e9   : > { %s3748_s19 = smov %s3139_s29  ;;  %s3749_s20 = smov %s3745_s12 }
 0x4ea   :  { %35 = sbr.rel (!%p33_p3) target bundleno = 18 (0x12), region = 151 }
 0x4f1   :  { %1944 = vsyncpa [#allocation3], 1 }
 0x4f2   :  { %1946 = vsyncpa [#allocation3 + $0x1], 1 }
 0x4f3   :  { %1947 = vsyncpa [#allocation6], 1 }
 0x4f4   :  { %1949 = vsyncpa [#allocation6 + $0x1], 1 }
 0x4f5   :  { %1950 = vsyncpa [#allocation9], 1 }
 0x4f6   :  { %1951 = vsyncpa [#allocation12], 1 }
 0x4f7   :  { %1952 = vsyncpa [#allocation4], 1 }
 0x4f8   :  { %1954 = vsyncpa [#allocation4 + $0x1], 1 }
 0x4f9   :  { %1955 = vsyncpa [#allocation15], 1 }
 0x4fa   :  { %1957 = vsyncpa [#allocation15 + $0x1], 1 }

</bundles_post_ra>
